<compile_context>
chip_gen: v7x
topology: tpu7x:2x2x1
jax: 0.10.0
libtpu: 0.0.40
codegen_flags: <defaults>
</compile_context>

<pallas_src>
import functools

import jax
import jax.numpy as jnp
from jax.experimental import pallas as pl
from jax.experimental.pallas import tpu as pltpu


# ------------------------------ Fused kernel ----------------------------------- #
def _fused_multihead_kernel(state_ref, x_ref,
                            qk_w1_ref, qk_b1_ref,
                            q_w2_ref, q_b2_ref,
                            k_w2_ref, k_b2_ref,
                            wq_in_ref, bq_in_ref,
                            wk_in_ref, bk_in_ref,
                            o_ref, *,
                            embedding_size, num_heads, use_bf16_mxu):
    B, L, I = x_ref.shape
    E = embedding_size
    H = num_heads
    hd = E // H
    hid = q_w2_ref.shape[0]            # hyper-net hidden width (64)

    # Optional bf16 cast of MXU operands only (accumulation stays f32 via
    # preferred_element_type; softmax/elementwise math stays f32 — v5e has no
    # bf16 VPU/EUP).  Off by default so the strict f32 reference check passes.
    cast = (lambda a: a.astype(jnp.bfloat16)) if use_bf16_mxu else (lambda a: a)

    # ---- hyper networks (q & k branches).  Layer 1 is a single matmul because the
    #      two branches' first-layer weights were concatenated in the wrapper. ----
    st = state_ref[...]                                                   # (B, S)
    h1 = jnp.dot(cast(st), cast(qk_w1_ref[...]),
                 preferred_element_type=jnp.float32) + qk_b1_ref[...]     # (B, 2*hid)
    h1 = jnp.maximum(h1, 0.0)
    hq = h1[:, :hid]
    hk = h1[:, hid:2 * hid]
    wq_flat = jnp.dot(cast(hq), cast(q_w2_ref[...]),
                      preferred_element_type=jnp.float32) + q_b2_ref[...]  # (B, I*E)
    wk_flat = jnp.dot(cast(hk), cast(k_w2_ref[...]),
                      preferred_element_type=jnp.float32) + k_b2_ref[...]  # (B, I*E)

    # ---- per-batch bmm: q_vec[b] = inputs[b] @ wq_flat[b].reshape(I, E) ----
    # Unrolled outer-product accumulation over the tiny contraction dim I keeps the
    # hyper-generated weights flat in VMEM (no in-kernel reshape/relayout needed);
    # each step is a static lane slice + broadcast + FMA on a (B, L, E) tile.
    x = x_ref[...]                                                        # (B, L, I)
    q_vec = x[:, :, 0:1] * wq_flat[:, None, 0:E]
    k_vec = x[:, :, 0:1] * wk_flat[:, None, 0:E]
    for i in range(1, I):
        xi = x[:, :, i:i + 1]                                             # (B, L, 1)
        q_vec = q_vec + xi * wq_flat[:, None, i * E:(i + 1) * E]
        k_vec = k_vec + xi * wk_flat[:, None, i * E:(i + 1) * E]

    # ---- nn.MultiheadAttention in-projection (q/k slices of in_proj_weight/bias) ----
    wq_in = jnp.broadcast_to(wq_in_ref[...], (B, E, E))
    wk_in = jnp.broadcast_to(wk_in_ref[...], (B, E, E))
    qp = jnp.einsum('ble,bef->blf', cast(q_vec), cast(wq_in),
                    preferred_element_type=jnp.float32) + bq_in_ref[...]   # (B, L, E)
    kp = jnp.einsum('ble,bef->blf', cast(k_vec), cast(wk_in),
                    preferred_element_type=jnp.float32) + bk_in_ref[...]   # (B, L, E)
    qp = qp * (1.0 / (hd ** 0.5))    # PyTorch scales q (incl. bias) by head_dim**-0.5

    # ---- heads stacked into the leading dim -> ONE batched matmul and ONE stacked
    #      softmax over all (head, batch) pairs ----
    q_heads = jnp.concatenate(
        [qp[:, :, h * hd:(h + 1) * hd] for h in range(H)], axis=0)         # (H*B, L, hd)
    k_heads = jnp.concatenate(
        [kp[:, :, h * hd:(h + 1) * hd] for h in range(H)], axis=0)         # (H*B, L, hd)
    s = jnp.einsum('nld,nmd->nlm', cast(q_heads), cast(k_heads),
                   preferred_element_type=jnp.float32)                     # (H*B, L, L)
    s = s - jnp.max(s, axis=-1, keepdims=True)
    e = jnp.exp(s)
    denom = jnp.sum(e, axis=-1, keepdims=True)
    # EUP approximate reciprocal; the mean-over-heads 1/H is folded into this multiply.
    w = e * (pl.reciprocal(denom, approx=True) * (1.0 / H))                # (H*B, L, L)

    # ---- average_attn_weights=True: mean over heads (1/H already applied) ----
    out = w[0:B]
    for h in range(1, H):
        out = out + w[h * B:(h + 1) * B]
    o_ref[...] = out


# ------------------------------ Module wrapper --------------------------------- #
def multihead_module_forward(state, inputs, params, *, input_size, embedding_size,
                             num_heads, use_bf16_mxu=False):
    """Forward pass of Multihead_Module; returns head-averaged attention weights."""
    B, L, I = inputs.shape
    assert I == input_size and embedding_size % num_heads == 0

    # Fuse the two hyper-net first layers (they share the same input `state`).
    qk_w1 = jnp.concatenate([params["q_w1"], params["k_w1"]], axis=1)      # (S, 128)
    qk_b1 = jnp.concatenate([params["q_b1"], params["k_b1"]], axis=1)      # (1, 128)

    # NOTE: the value path (hyper_v / v_vec and MultiheadAttention's value/output
    # projections) has zero effect on the returned attention weights, so it is not
    # computed at all.
    kernel = functools.partial(_fused_multihead_kernel,
                               embedding_size=embedding_size,
                               num_heads=num_heads,
                               use_bf16_mxu=use_bf16_mxu)

    vmem = pl.BlockSpec(memory_space=pltpu.MemorySpace.VMEM)
    operands = (state, inputs, qk_w1, qk_b1,
                params["q_w2"], params["q_b2"],
                params["k_w2"], params["k_b2"],
                params["wq_in"], params["bq_in"],
                params["wk_in"], params["bk_in"])

    # Single kernel invocation (no grid): at these shapes every operand is a few KiB,
    # so launch/pipeline overhead dominates and one fused step is optimal on v5e/v6e.
    # For large batches on v7x, add a 2-wide "parallel" grid over batch so both
    # TensorCores get work.
    return pl.pallas_call(
        kernel,
        out_shape=jax.ShapeDtypeStruct((B, L, L), jnp.float32),
        in_specs=[vmem] * len(operands),
        out_specs=vmem,
    )(*operands)


# ------------------------------ Pure-JAX reference ------------------------------ #
def reference_forward(state, inputs, p, *, input_size, embedding_size, num_heads):
    def mlp(x, w1, b1, w2, b2):
        return jnp.maximum(x @ w1 + b1, 0.0) @ w2 + b2

    B, L, _ = inputs.shape
    E = embedding_size
    wq = mlp(state, p["q_w1"], p["q_b1"], p["q_w2"], p["q_b2"]).reshape(B, input_size, E)
    wk = mlp(state, p["k_w1"], p["k_b1"], p["k_w2"], p["k_b2"]).reshape(B, input_size, E)
    q_vec = jnp.einsum("bli,bie->ble", inputs, wq)
    k_vec = jnp.einsum("bli,bie->ble", inputs, wk)
    qp = q_vec @ p["wq_in"] + p["bq_in"]
    kp = k_vec @ p["wk_in"] + p["bk_in"]
    hd = E // num_heads
    qp = qp.reshape(B, L, num_heads, hd) * (hd ** -0.5)
    kp = kp.reshape(B, L, num_heads, hd)
    s = jnp.einsum("blhd,bshd->bhls", qp, kp)
    w = jax.nn.softmax(s, axis=-1)
    return w.mean(axis=1)


if __name__ == "__main__":
    # Small, forward-consistent shapes.
    B = 2
    state_size = 16
    input_size = 8
    num_heads = 4
    Seq_len = 8
    embedding_size = 32   # must be divisible by num_heads

    key = jax.random.PRNGKey(0)
    ks = jax.random.split(key, 18)

    def init(k, shape, scale=0.1):
        return (scale * jax.random.normal(k, shape)).astype(jnp.float32)

    params = {
        # hyper_q
        "q_w1": init(ks[0], (state_size, 64)), "q_b1": init(ks[1], (1, 64)),
        "q_w2": init(ks[2], (64, input_size * embedding_size)),
        "q_b2": init(ks[3], (1, input_size * embedding_size)),
        # hyper_k
        "k_w1": init(ks[4], (state_size, 64)), "k_b1": init(ks[5], (1, 64)),
        "k_w2": init(ks[6], (64, input_size * embedding_size)),
        "k_b2": init(ks[7], (1, input_size * embedding_size)),
        # hyper_v exists in the PyTorch module but provably does not affect the
        # returned attention weights; kept here only for parameter-structure parity.
        "v_w1": init(ks[8], (state_size, 64)), "v_b1": init(ks[9], (1, 64)),
        "v_w2": init(ks[10], (64, input_size * embedding_size)),
        "v_b2": init(ks[11], (1, input_size * embedding_size)),
        # MultiheadAttention in-projection (q/k slices of in_proj_weight/bias),
        # stored (in, out) i.e. transposed relative to PyTorch's (E, E) layout.
        "wq_in": init(ks[12], (embedding_size, embedding_size)),
        "bq_in": init(ks[13], (1, embedding_size)),
        "wk_in": init(ks[14], (embedding_size, embedding_size)),
        "bk_in": init(ks[15], (1, embedding_size)),
    }

    state = init(ks[16], (B, state_size), scale=1.0)
    inputs = init(ks[17], (B, Seq_len, input_size), scale=1.0)

    out = multihead_module_forward(state, inputs, params,
                                   input_size=input_size,
                                   embedding_size=embedding_size,
                                   num_heads=num_heads)
    out = jax.block_until_ready(out)

    ref = reference_forward(state, inputs, params,
                            input_size=input_size,
                            embedding_size=embedding_size,
                            num_heads=num_heads)
    assert out.shape == (B, Seq_len, Seq_len)
    # Tolerance accounts for the EUP approximate reciprocal used in the softmax
    # normalization (weights are O(1/Seq_len), so 2e-3 abs is still a tight check).
    assert jnp.allclose(out, ref, atol=2e-3, rtol=2e-3), "mismatch vs reference"
    print("KERNEL_OK")
</pallas_src>

<mosaic_0001>
module attributes {stable_mosaic.version = 11 : i64} {
  func.func @_fused_multihead_kernel(%arg0: memref<2x16xf32, #tpu.memory_space<vmem>>, %arg1: memref<2x8x8xf32, #tpu.memory_space<vmem>>, %arg2: memref<16x128xf32, #tpu.memory_space<vmem>>, %arg3: memref<1x128xf32, #tpu.memory_space<vmem>>, %arg4: memref<64x256xf32, #tpu.memory_space<vmem>>, %arg5: memref<1x256xf32, #tpu.memory_space<vmem>>, %arg6: memref<64x256xf32, #tpu.memory_space<vmem>>, %arg7: memref<1x256xf32, #tpu.memory_space<vmem>>, %arg8: memref<32x32xf32, #tpu.memory_space<vmem>>, %arg9: memref<1x32xf32, #tpu.memory_space<vmem>>, %arg10: memref<32x32xf32, #tpu.memory_space<vmem>>, %arg11: memref<1x32xf32, #tpu.memory_space<vmem>>, %arg12: memref<2x8x8xf32, #tpu.memory_space<vmem>>) attributes {dimension_semantics = [], scalar_prefetch = 0 : i64, scratch_operands = 0 : i64, tpu.core_type = #tpu.core_type<tc>} {
    %c0 = arith.constant 0 : index
    %c0_0 = arith.constant 0 : index
    %0 = vector.load %arg0[%c0, %c0_0] : memref<2x16xf32, #tpu.memory_space<vmem>>, vector<2x16xf32>
    %c0_1 = arith.constant 0 : index
    %c0_2 = arith.constant 0 : index
    %1 = vector.load %arg2[%c0_1, %c0_2] : memref<16x128xf32, #tpu.memory_space<vmem>>, vector<16x128xf32>
    %cst = arith.constant dense<0.000000e+00> : vector<2x128xf32>
    %2 = tpu.matmul %0, %1, %cst {dimension_numbers = #tpu.dot_dimension_numbers<[1], [0], [0], [1], [0, 0, 1, 1], [], []>} : vector<2x16xf32>, vector<16x128xf32>, vector<2x128xf32> -> vector<2x128xf32>
    %c0_3 = arith.constant 0 : index
    %c0_4 = arith.constant 0 : index
    %3 = vector.load %arg3[%c0_3, %c0_4] : memref<1x128xf32, #tpu.memory_space<vmem>>, vector<1x128xf32>
    %4 = vector.broadcast %3 : vector<1x128xf32> to vector<2x128xf32>
    %5 = arith.addf %2, %4 : vector<2x128xf32>
    %cst_5 = arith.constant 0.000000e+00 : f32
    %6 = vector.broadcast %cst_5 : f32 to vector<2x128xf32>
    %7 = arith.maximumf %5, %6 : vector<2x128xf32>
    %8 = vector.extract_strided_slice %7 {offsets = [0, 0], sizes = [2, 64], strides = [1, 1]} : vector<2x128xf32> to vector<2x64xf32>
    %9 = vector.extract_strided_slice %7 {offsets = [0, 64], sizes = [2, 64], strides = [1, 1]} : vector<2x128xf32> to vector<2x64xf32>
    %c0_6 = arith.constant 0 : index
    %c0_7 = arith.constant 0 : index
    %10 = vector.load %arg4[%c0_6, %c0_7] : memref<64x256xf32, #tpu.memory_space<vmem>>, vector<64x256xf32>
    %cst_8 = arith.constant dense<0.000000e+00> : vector<2x256xf32>
    %11 = tpu.matmul %8, %10, %cst_8 {dimension_numbers = #tpu.dot_dimension_numbers<[1], [0], [0], [1], [0, 0, 1, 1], [], []>} : vector<2x64xf32>, vector<64x256xf32>, vector<2x256xf32> -> vector<2x256xf32>
    %c0_9 = arith.constant 0 : index
    %c0_10 = arith.constant 0 : index
    %12 = vector.load %arg5[%c0_9, %c0_10] : memref<1x256xf32, #tpu.memory_space<vmem>>, vector<1x256xf32>
    %13 = vector.broadcast %12 : vector<1x256xf32> to vector<2x256xf32>
    %14 = arith.addf %11, %13 : vector<2x256xf32>
    %c0_11 = arith.constant 0 : index
    %c0_12 = arith.constant 0 : index
    %15 = vector.load %arg6[%c0_11, %c0_12] : memref<64x256xf32, #tpu.memory_space<vmem>>, vector<64x256xf32>
    %cst_13 = arith.constant dense<0.000000e+00> : vector<2x256xf32>
    %16 = tpu.matmul %9, %15, %cst_13 {dimension_numbers = #tpu.dot_dimension_numbers<[1], [0], [0], [1], [0, 0, 1, 1], [], []>} : vector<2x64xf32>, vector<64x256xf32>, vector<2x256xf32> -> vector<2x256xf32>
    %c0_14 = arith.constant 0 : index
    %c0_15 = arith.constant 0 : index
    %17 = vector.load %arg7[%c0_14, %c0_15] : memref<1x256xf32, #tpu.memory_space<vmem>>, vector<1x256xf32>
    %18 = vector.broadcast %17 : vector<1x256xf32> to vector<2x256xf32>
    %19 = arith.addf %16, %18 : vector<2x256xf32>
    %c0_16 = arith.constant 0 : index
    %c0_17 = arith.constant 0 : index
    %c0_18 = arith.constant 0 : index
    %20 = vector.load %arg1[%c0_16, %c0_17, %c0_18] : memref<2x8x8xf32, #tpu.memory_space<vmem>>, vector<2x8x8xf32>
    %21 = vector.extract_strided_slice %20 {offsets = [0, 0, 0], sizes = [2, 8, 1], strides = [1, 1, 1]} : vector<2x8x8xf32> to vector<2x8x1xf32>
    %22 = vector.extract_strided_slice %14 {offsets = [0, 0], sizes = [2, 32], strides = [1, 1]} : vector<2x256xf32> to vector<2x32xf32>
    %23 = vector.shape_cast %22 : vector<2x32xf32> to vector<2x1x32xf32>
    %24 = vector.broadcast %21 : vector<2x8x1xf32> to vector<2x8x32xf32>
    %25 = vector.broadcast %23 : vector<2x1x32xf32> to vector<2x8x32xf32>
    %26 = arith.mulf %24, %25 : vector<2x8x32xf32>
    %27 = vector.extract_strided_slice %20 {offsets = [0, 0, 0], sizes = [2, 8, 1], strides = [1, 1, 1]} : vector<2x8x8xf32> to vector<2x8x1xf32>
    %28 = vector.extract_strided_slice %19 {offsets = [0, 0], sizes = [2, 32], strides = [1, 1]} : vector<2x256xf32> to vector<2x32xf32>
    %29 = vector.shape_cast %28 : vector<2x32xf32> to vector<2x1x32xf32>
    %30 = vector.broadcast %27 : vector<2x8x1xf32> to vector<2x8x32xf32>
    %31 = vector.broadcast %29 : vector<2x1x32xf32> to vector<2x8x32xf32>
    %32 = arith.mulf %30, %31 : vector<2x8x32xf32>
    %33 = vector.extract_strided_slice %20 {offsets = [0, 0, 1], sizes = [2, 8, 1], strides = [1, 1, 1]} : vector<2x8x8xf32> to vector<2x8x1xf32>
    %34 = vector.extract_strided_slice %14 {offsets = [0, 32], sizes = [2, 32], strides = [1, 1]} : vector<2x256xf32> to vector<2x32xf32>
    %35 = vector.shape_cast %34 : vector<2x32xf32> to vector<2x1x32xf32>
    %36 = vector.broadcast %33 : vector<2x8x1xf32> to vector<2x8x32xf32>
    %37 = vector.broadcast %35 : vector<2x1x32xf32> to vector<2x8x32xf32>
    %38 = arith.mulf %36, %37 : vector<2x8x32xf32>
    %39 = arith.addf %26, %38 : vector<2x8x32xf32>
    %40 = vector.extract_strided_slice %19 {offsets = [0, 32], sizes = [2, 32], strides = [1, 1]} : vector<2x256xf32> to vector<2x32xf32>
    %41 = vector.shape_cast %40 : vector<2x32xf32> to vector<2x1x32xf32>
    %42 = vector.broadcast %33 : vector<2x8x1xf32> to vector<2x8x32xf32>
    %43 = vector.broadcast %41 : vector<2x1x32xf32> to vector<2x8x32xf32>
    %44 = arith.mulf %42, %43 : vector<2x8x32xf32>
    %45 = arith.addf %32, %44 : vector<2x8x32xf32>
    %46 = vector.extract_strided_slice %20 {offsets = [0, 0, 2], sizes = [2, 8, 1], strides = [1, 1, 1]} : vector<2x8x8xf32> to vector<2x8x1xf32>
    %47 = vector.extract_strided_slice %14 {offsets = [0, 64], sizes = [2, 32], strides = [1, 1]} : vector<2x256xf32> to vector<2x32xf32>
    %48 = vector.shape_cast %47 : vector<2x32xf32> to vector<2x1x32xf32>
    %49 = vector.broadcast %46 : vector<2x8x1xf32> to vector<2x8x32xf32>
    %50 = vector.broadcast %48 : vector<2x1x32xf32> to vector<2x8x32xf32>
    %51 = arith.mulf %49, %50 : vector<2x8x32xf32>
    %52 = arith.addf %39, %51 : vector<2x8x32xf32>
    %53 = vector.extract_strided_slice %19 {offsets = [0, 64], sizes = [2, 32], strides = [1, 1]} : vector<2x256xf32> to vector<2x32xf32>
    %54 = vector.shape_cast %53 : vector<2x32xf32> to vector<2x1x32xf32>
    %55 = vector.broadcast %46 : vector<2x8x1xf32> to vector<2x8x32xf32>
    %56 = vector.broadcast %54 : vector<2x1x32xf32> to vector<2x8x32xf32>
    %57 = arith.mulf %55, %56 : vector<2x8x32xf32>
    %58 = arith.addf %45, %57 : vector<2x8x32xf32>
    %59 = vector.extract_strided_slice %20 {offsets = [0, 0, 3], sizes = [2, 8, 1], strides = [1, 1, 1]} : vector<2x8x8xf32> to vector<2x8x1xf32>
    %60 = vector.extract_strided_slice %14 {offsets = [0, 96], sizes = [2, 32], strides = [1, 1]} : vector<2x256xf32> to vector<2x32xf32>
    %61 = vector.shape_cast %60 : vector<2x32xf32> to vector<2x1x32xf32>
    %62 = vector.broadcast %59 : vector<2x8x1xf32> to vector<2x8x32xf32>
    %63 = vector.broadcast %61 : vector<2x1x32xf32> to vector<2x8x32xf32>
    %64 = arith.mulf %62, %63 : vector<2x8x32xf32>
    %65 = arith.addf %52, %64 : vector<2x8x32xf32>
    %66 = vector.extract_strided_slice %19 {offsets = [0, 96], sizes = [2, 32], strides = [1, 1]} : vector<2x256xf32> to vector<2x32xf32>
    %67 = vector.shape_cast %66 : vector<2x32xf32> to vector<2x1x32xf32>
    %68 = vector.broadcast %59 : vector<2x8x1xf32> to vector<2x8x32xf32>
    %69 = vector.broadcast %67 : vector<2x1x32xf32> to vector<2x8x32xf32>
    %70 = arith.mulf %68, %69 : vector<2x8x32xf32>
    %71 = arith.addf %58, %70 : vector<2x8x32xf32>
    %72 = vector.extract_strided_slice %20 {offsets = [0, 0, 4], sizes = [2, 8, 1], strides = [1, 1, 1]} : vector<2x8x8xf32> to vector<2x8x1xf32>
    %73 = vector.extract_strided_slice %14 {offsets = [0, 128], sizes = [2, 32], strides = [1, 1]} : vector<2x256xf32> to vector<2x32xf32>
    %74 = vector.shape_cast %73 : vector<2x32xf32> to vector<2x1x32xf32>
    %75 = vector.broadcast %72 : vector<2x8x1xf32> to vector<2x8x32xf32>
    %76 = vector.broadcast %74 : vector<2x1x32xf32> to vector<2x8x32xf32>
    %77 = arith.mulf %75, %76 : vector<2x8x32xf32>
    %78 = arith.addf %65, %77 : vector<2x8x32xf32>
    %79 = vector.extract_strided_slice %19 {offsets = [0, 128], sizes = [2, 32], strides = [1, 1]} : vector<2x256xf32> to vector<2x32xf32>
    %80 = vector.shape_cast %79 : vector<2x32xf32> to vector<2x1x32xf32>
    %81 = vector.broadcast %72 : vector<2x8x1xf32> to vector<2x8x32xf32>
    %82 = vector.broadcast %80 : vector<2x1x32xf32> to vector<2x8x32xf32>
    %83 = arith.mulf %81, %82 : vector<2x8x32xf32>
    %84 = arith.addf %71, %83 : vector<2x8x32xf32>
    %85 = vector.extract_strided_slice %20 {offsets = [0, 0, 5], sizes = [2, 8, 1], strides = [1, 1, 1]} : vector<2x8x8xf32> to vector<2x8x1xf32>
    %86 = vector.extract_strided_slice %14 {offsets = [0, 160], sizes = [2, 32], strides = [1, 1]} : vector<2x256xf32> to vector<2x32xf32>
    %87 = vector.shape_cast %86 : vector<2x32xf32> to vector<2x1x32xf32>
    %88 = vector.broadcast %85 : vector<2x8x1xf32> to vector<2x8x32xf32>
    %89 = vector.broadcast %87 : vector<2x1x32xf32> to vector<2x8x32xf32>
    %90 = arith.mulf %88, %89 : vector<2x8x32xf32>
    %91 = arith.addf %78, %90 : vector<2x8x32xf32>
    %92 = vector.extract_strided_slice %19 {offsets = [0, 160], sizes = [2, 32], strides = [1, 1]} : vector<2x256xf32> to vector<2x32xf32>
    %93 = vector.shape_cast %92 : vector<2x32xf32> to vector<2x1x32xf32>
    %94 = vector.broadcast %85 : vector<2x8x1xf32> to vector<2x8x32xf32>
    %95 = vector.broadcast %93 : vector<2x1x32xf32> to vector<2x8x32xf32>
    %96 = arith.mulf %94, %95 : vector<2x8x32xf32>
    %97 = arith.addf %84, %96 : vector<2x8x32xf32>
    %98 = vector.extract_strided_slice %20 {offsets = [0, 0, 6], sizes = [2, 8, 1], strides = [1, 1, 1]} : vector<2x8x8xf32> to vector<2x8x1xf32>
    %99 = vector.extract_strided_slice %14 {offsets = [0, 192], sizes = [2, 32], strides = [1, 1]} : vector<2x256xf32> to vector<2x32xf32>
    %100 = vector.shape_cast %99 : vector<2x32xf32> to vector<2x1x32xf32>
    %101 = vector.broadcast %98 : vector<2x8x1xf32> to vector<2x8x32xf32>
    %102 = vector.broadcast %100 : vector<2x1x32xf32> to vector<2x8x32xf32>
    %103 = arith.mulf %101, %102 : vector<2x8x32xf32>
    %104 = arith.addf %91, %103 : vector<2x8x32xf32>
    %105 = vector.extract_strided_slice %19 {offsets = [0, 192], sizes = [2, 32], strides = [1, 1]} : vector<2x256xf32> to vector<2x32xf32>
    %106 = vector.shape_cast %105 : vector<2x32xf32> to vector<2x1x32xf32>
    %107 = vector.broadcast %98 : vector<2x8x1xf32> to vector<2x8x32xf32>
    %108 = vector.broadcast %106 : vector<2x1x32xf32> to vector<2x8x32xf32>
    %109 = arith.mulf %107, %108 : vector<2x8x32xf32>
    %110 = arith.addf %97, %109 : vector<2x8x32xf32>
    %111 = vector.extract_strided_slice %20 {offsets = [0, 0, 7], sizes = [2, 8, 1], strides = [1, 1, 1]} : vector<2x8x8xf32> to vector<2x8x1xf32>
    %112 = vector.extract_strided_slice %14 {offsets = [0, 224], sizes = [2, 32], strides = [1, 1]} : vector<2x256xf32> to vector<2x32xf32>
    %113 = vector.shape_cast %112 : vector<2x32xf32> to vector<2x1x32xf32>
    %114 = vector.broadcast %111 : vector<2x8x1xf32> to vector<2x8x32xf32>
    %115 = vector.broadcast %113 : vector<2x1x32xf32> to vector<2x8x32xf32>
    %116 = arith.mulf %114, %115 : vector<2x8x32xf32>
    %117 = arith.addf %104, %116 : vector<2x8x32xf32>
    %118 = vector.extract_strided_slice %19 {offsets = [0, 224], sizes = [2, 32], strides = [1, 1]} : vector<2x256xf32> to vector<2x32xf32>
    %119 = vector.shape_cast %118 : vector<2x32xf32> to vector<2x1x32xf32>
    %120 = vector.broadcast %111 : vector<2x8x1xf32> to vector<2x8x32xf32>
    %121 = vector.broadcast %119 : vector<2x1x32xf32> to vector<2x8x32xf32>
    %122 = arith.mulf %120, %121 : vector<2x8x32xf32>
    %123 = arith.addf %110, %122 : vector<2x8x32xf32>
    %c0_19 = arith.constant 0 : index
    %c0_20 = arith.constant 0 : index
    %124 = vector.load %arg8[%c0_19, %c0_20] : memref<32x32xf32, #tpu.memory_space<vmem>>, vector<32x32xf32>
    %125 = vector.shape_cast %124 : vector<32x32xf32> to vector<1x32x32xf32>
    %126 = vector.broadcast %125 : vector<1x32x32xf32> to vector<2x32x32xf32>
    %c0_21 = arith.constant 0 : index
    %c0_22 = arith.constant 0 : index
    %127 = vector.load %arg10[%c0_21, %c0_22] : memref<32x32xf32, #tpu.memory_space<vmem>>, vector<32x32xf32>
    %128 = vector.shape_cast %127 : vector<32x32xf32> to vector<1x32x32xf32>
    %129 = vector.broadcast %128 : vector<1x32x32xf32> to vector<2x32x32xf32>
    "tpu.trace_start"() <{level = 10 : i32, message = "ble,bef->blf"}> : () -> ()
    %cst_23 = arith.constant dense<0.000000e+00> : vector<2x8x32xf32>
    %130 = tpu.matmul %117, %126, %cst_23 {dimension_numbers = #tpu.dot_dimension_numbers<[2], [1], [1], [2], [0, 0, 0, 1, 1, 2], [0], [0]>} : vector<2x8x32xf32>, vector<2x32x32xf32>, vector<2x8x32xf32> -> vector<2x8x32xf32>
    "tpu.trace_stop"() : () -> ()
    %c0_24 = arith.constant 0 : index
    %c0_25 = arith.constant 0 : index
    %131 = vector.load %arg9[%c0_24, %c0_25] : memref<1x32xf32, #tpu.memory_space<vmem>>, vector<1x32xf32>
    %132 = vector.shape_cast %131 : vector<1x32xf32> to vector<1x1x32xf32>
    %133 = vector.broadcast %132 : vector<1x1x32xf32> to vector<2x8x32xf32>
    %134 = arith.addf %130, %133 : vector<2x8x32xf32>
    "tpu.trace_start"() <{level = 10 : i32, message = "ble,bef->blf"}> : () -> ()
    %cst_26 = arith.constant dense<0.000000e+00> : vector<2x8x32xf32>
    %135 = tpu.matmul %123, %129, %cst_26 {dimension_numbers = #tpu.dot_dimension_numbers<[2], [1], [1], [2], [0, 0, 0, 1, 1, 2], [0], [0]>} : vector<2x8x32xf32>, vector<2x32x32xf32>, vector<2x8x32xf32> -> vector<2x8x32xf32>
    "tpu.trace_stop"() : () -> ()
    %c0_27 = arith.constant 0 : index
    %c0_28 = arith.constant 0 : index
    %136 = vector.load %arg11[%c0_27, %c0_28] : memref<1x32xf32, #tpu.memory_space<vmem>>, vector<1x32xf32>
    %137 = vector.shape_cast %136 : vector<1x32xf32> to vector<1x1x32xf32>
    %138 = vector.broadcast %137 : vector<1x1x32xf32> to vector<2x8x32xf32>
    %139 = arith.addf %135, %138 : vector<2x8x32xf32>
    %cst_29 = arith.constant 0.353553385 : f32
    %140 = vector.broadcast %cst_29 : f32 to vector<2x8x32xf32>
    %141 = arith.mulf %134, %140 : vector<2x8x32xf32>
    %142 = vector.extract_strided_slice %141 {offsets = [0, 0, 0], sizes = [2, 8, 8], strides = [1, 1, 1]} : vector<2x8x32xf32> to vector<2x8x8xf32>
    %143 = vector.extract_strided_slice %141 {offsets = [0, 0, 8], sizes = [2, 8, 8], strides = [1, 1, 1]} : vector<2x8x32xf32> to vector<2x8x8xf32>
    %144 = vector.extract_strided_slice %141 {offsets = [0, 0, 16], sizes = [2, 8, 8], strides = [1, 1, 1]} : vector<2x8x32xf32> to vector<2x8x8xf32>
    %145 = vector.extract_strided_slice %141 {offsets = [0, 0, 24], sizes = [2, 8, 8], strides = [1, 1, 1]} : vector<2x8x32xf32> to vector<2x8x8xf32>
    %146 = tpu.concatenate %142, %143, %144, %145 in 0 : vector<2x8x8xf32>, vector<2x8x8xf32>, vector<2x8x8xf32>, vector<2x8x8xf32> -> vector<8x8x8xf32>
    %147 = vector.extract_strided_slice %139 {offsets = [0, 0, 0], sizes = [2, 8, 8], strides = [1, 1, 1]} : vector<2x8x32xf32> to vector<2x8x8xf32>
    %148 = vector.extract_strided_slice %139 {offsets = [0, 0, 8], sizes = [2, 8, 8], strides = [1, 1, 1]} : vector<2x8x32xf32> to vector<2x8x8xf32>
    %149 = vector.extract_strided_slice %139 {offsets = [0, 0, 16], sizes = [2, 8, 8], strides = [1, 1, 1]} : vector<2x8x32xf32> to vector<2x8x8xf32>
    %150 = vector.extract_strided_slice %139 {offsets = [0, 0, 24], sizes = [2, 8, 8], strides = [1, 1, 1]} : vector<2x8x32xf32> to vector<2x8x8xf32>
    %151 = tpu.concatenate %147, %148, %149, %150 in 0 : vector<2x8x8xf32>, vector<2x8x8xf32>, vector<2x8x8xf32>, vector<2x8x8xf32> -> vector<8x8x8xf32>
    "tpu.trace_start"() <{level = 10 : i32, message = "nld,nmd->nlm"}> : () -> ()
    %cst_30 = arith.constant dense<0.000000e+00> : vector<8x8x8xf32>
    %152 = tpu.matmul %146, %151, %cst_30 {dimension_numbers = #tpu.dot_dimension_numbers<[2], [2], [1], [1], [0, 0, 0, 1, 1, 1], [0], [0]>} : vector<8x8x8xf32>, vector<8x8x8xf32>, vector<8x8x8xf32> -> vector<8x8x8xf32>
    "tpu.trace_stop"() : () -> ()
    %cst_31 = arith.constant dense<0xFF800000> : vector<8x8xf32>
    %153 = vector.multi_reduction <maximumf>, %152, %cst_31 [2] : vector<8x8x8xf32> to vector<8x8xf32>
    %154 = vector.shape_cast %153 : vector<8x8xf32> to vector<8x8x1xf32>
    %155 = vector.broadcast %154 : vector<8x8x1xf32> to vector<8x8x8xf32>
    %156 = arith.subf %152, %155 : vector<8x8x8xf32>
    %157 = math.exp %156 : vector<8x8x8xf32>
    %cst_32 = arith.constant dense<0.000000e+00> : vector<8x8xf32>
    %158 = vector.multi_reduction <add>, %157, %cst_32 [2] : vector<8x8x8xf32> to vector<8x8xf32>
    %159 = vector.shape_cast %158 : vector<8x8xf32> to vector<8x8x1xf32>
    %160 = tpu.reciprocal %159 {approx = true} : vector<8x8x1xf32> -> vector<8x8x1xf32>
    %cst_33 = arith.constant 2.500000e-01 : f32
    %161 = vector.broadcast %cst_33 : f32 to vector<8x8x1xf32>
    %162 = arith.mulf %160, %161 : vector<8x8x1xf32>
    %163 = vector.broadcast %162 : vector<8x8x1xf32> to vector<8x8x8xf32>
    %164 = arith.mulf %157, %163 : vector<8x8x8xf32>
    %165 = vector.extract_strided_slice %164 {offsets = [0, 0, 0], sizes = [2, 8, 8], strides = [1, 1, 1]} : vector<8x8x8xf32> to vector<2x8x8xf32>
    %166 = vector.extract_strided_slice %164 {offsets = [2, 0, 0], sizes = [2, 8, 8], strides = [1, 1, 1]} : vector<8x8x8xf32> to vector<2x8x8xf32>
    %167 = arith.addf %165, %166 : vector<2x8x8xf32>
    %168 = vector.extract_strided_slice %164 {offsets = [4, 0, 0], sizes = [2, 8, 8], strides = [1, 1, 1]} : vector<8x8x8xf32> to vector<2x8x8xf32>
    %169 = arith.addf %167, %168 : vector<2x8x8xf32>
    %170 = vector.extract_strided_slice %164 {offsets = [6, 0, 0], sizes = [2, 8, 8], strides = [1, 1, 1]} : vector<8x8x8xf32> to vector<2x8x8xf32>
    %171 = arith.addf %169, %170 : vector<2x8x8xf32>
    %c0_34 = arith.constant 0 : index
    %c0_35 = arith.constant 0 : index
    %c0_36 = arith.constant 0 : index
    %172 = vector.load %arg12[%c0_34, %c0_35, %c0_36] : memref<2x8x8xf32, #tpu.memory_space<vmem>>, vector<2x8x8xf32>
    tpu.vector_store %arg12[%c0_34, %c0_35, %c0_36], %171 {strides = array<i32>} : memref<2x8x8xf32, #tpu.memory_space<vmem>>, vector<2x8x8xf32>,
    return
  }
}

</mosaic_0001>

<bundles_post_ra>
// kernel: tpu_custom_call.1
= control target key start
LH: loop header
LB: loop body
LE: loop exit
PB: predicated region body
PF: predicated region fallthrough
CT: control target
= control target key end

     0   :  { %17 = vsyncpa [#allocation3], 0  ;;  %s2846_s0 = inlined_call_operand.hbm [shape: f32[2,16], index: 0, kind: input, shape index: {}]   ;;  %s2847_s1 = inlined_call_operand.hbm [shape: f32[2,8,8], index: 1, kind: input, shape index: {}]   ;;  %s2848_s2 = inlined_call_operand.hbm [shape: f32[16,128], index: 2, kind: input, shape index: {}]   ;;  %s2849_s3 = inlined_call_operand.vmem [shape: f32[1,128], index: 3, kind: input, shape index: {}]   ;;  %s2850_s4 = inlined_call_operand.hbm [shape: f32[64,256], index: 4, kind: input, shape index: {}]   ;;  %s2851_s5 = inlined_call_operand.vmem [shape: f32[1,256], index: 5, kind: input, shape index: {}]   ;;  %s2852_s6 = inlined_call_operand.hbm [shape: f32[64,256], index: 6, kind: input, shape index: {}]   ;;  %s2853_s7 = inlined_call_operand.vmem [shape: f32[1,256], index: 7, kind: input, shape index: {}]   ;;  %s2854_s8 = inlined_call_operand.hbm [shape: f32[32,32], index: 8, kind: input, shape index: {}]   ;;  %s2855_s9 = inlined_call_operand.hbm [shape: f32[1,32], index: 9, kind: input, shape index: {}]   ;;  %s2856_s10 = inlined_call_operand.vmem [shape: f32[32,32], index: 10, kind: input, shape index: {}]   ;;  %s2857_s11 = inlined_call_operand.vmem [shape: f32[1,32], index: 11, kind: input, shape index: {}]   ;;  %s2858_s12 = inlined_call_operand.hbm [shape: f32[2,8,8], index: 12, kind: output, shape index: {}]  }
   0x1   :  { %18 = vsyncpa [#allocation6], 0 }
   0x2   :  { %19 = vsyncpa [#allocation9], 0 }
   0x3   :  { %20 = vsyncpa [#allocation12], 0 }
   0x4   :  { %21 = vsyncpa [#allocation4], 0  ;;  %s2319_s21 = smov [#allocation5]   ;;  %s2133_s25 = scalar_lea.hbm %s2847_s1, 256 }
   0x5   :  { %s37_s22 = sshll.u32 %s2319_s21, 4  ;;  %p2134_p0 = scmp.ne.s32.totalorder %s2847_s1, %s2133_s25  ;;  %s38_s22 = int_to_ptr.vmem [resolvable:$true] %s37_s22 }
   0x6   :  { %p2137_p1 = scmp.lt.u32.totalorder %s2133_s25, %s2847_s1 }
   0x8   :  { %p2139_p2 = pnand %p2137_p1, %p2134_p0 }
   0xa   :  { %2142 = shalt.err (!%p2139_p2)
}
   0xb   :  { %s2143_s30 = scalar_lea.vmem %s38_s22, 256  ;;  %p2148_p4 = scmp.lt.s32.totalorder %s38_s22, %s38_s22 }
   0xc   :  { %p2144_p3 = scmp.ne.s32.totalorder %s38_s22, %s2143_s30  ;;  %p2149_p5 = scmp.lt.s32.totalorder %s2143_s30, %s2143_s30 }
   0xe   :  { %p2150_p6 = por %p2149_p5, %p2148_p4 }
  0x10   :  { %p2151_p7 = pnand %p2150_p6, %p2144_p3 }
  0x12   :  { %2154 = shalt.err (!%p2151_p7)
}
  0x13   :  { %s2320_s13 = smov 128   ;;  %s2321_s14 = smov 8  }
  0x14   :  { %43 = dma.hbm_to_vmem [thread:$0]  %s2847_s1, 256, %s38_s22, [#allocation6], %s2320_s13, %s2320_s13, %s2321_s14  }
  0x15   :  { %s2322_s17 = smov [#allocation8]   ;;  %s2155_s21 = scalar_lea.hbm %s2850_s4, 2048 }
  0x16   :  { %s63_s18 = sshll.u32 %s2322_s17, 4  ;;  %p2156_p8 = scmp.ne.s32.totalorder %s2850_s4, %s2155_s21  ;;  %s64_s18 = int_to_ptr.vmem [resolvable:$true] %s63_s18 }
  0x17   :  { %p2159_p9 = scmp.lt.u32.totalorder %s2155_s21, %s2850_s4 }
  0x19   :  { %p2161_p10 = pnand %p2159_p9, %p2156_p8 }
  0x1b   :  { %2164 = shalt.err (!%p2161_p10)
}
  0x1c   :  { %s2165_s27 = scalar_lea.vmem %s64_s18, 2048  ;;  %p2170_p12 = scmp.lt.s32.totalorder %s64_s18, %s64_s18 }
  0x1d   :  { %p2166_p11 = scmp.ne.s32.totalorder %s64_s18, %s2165_s27  ;;  %p2171_p13 = scmp.lt.s32.totalorder %s2165_s27, %s2165_s27 }
  0x1f   :  { %p2172_p0 = por %p2171_p13, %p2170_p12 }
  0x21   :  { %p2173_p1 = pnand %p2172_p0, %p2166_p11 }
  0x23   :  { %2176 = shalt.err (!%p2173_p1)
}
  0x24   :  { %s2323_s1 = smov 256   ;;  %s2324_s22 = smov 16  }
  0x25   :  { %69 = dma.hbm_to_vmem [thread:$0]  %s2850_s4, 2048, %s64_s18, [#allocation9], %s2323_s1, %s2323_s1, %s2324_s22  }
  0x26   :  { %s2325_s30 = smov [#allocation11]   ;;  %s2326_s16 = smov [#allocation2]  }
  0x27   :  { %s91_s15 = sshll.u32 %s2325_s30, 4  ;;  %s28_s17 = sshll.u32 %s2326_s16, 4  ;;  %s92_s15 = int_to_ptr.vmem [resolvable:$true] %s91_s15  ;;  %s29_s17 = int_to_ptr.vmem [resolvable:$true] %s28_s17 }
  0x28   :  { %s2177_s21 = scalar_lea.hbm %s2854_s8, 512 }
  0x29   :  { %p2178_p2 = scmp.ne.s32.totalorder %s2854_s8, %s2177_s21  ;;  %p2181_p3 = scmp.lt.u32.totalorder %s2177_s21, %s2854_s8 }
  0x2b   :  { %p2183_p4 = pnand %p2181_p3, %p2178_p2 }
  0x2d   :  { %2186 = shalt.err (!%p2183_p4)
}
  0x2e   :  { %s2187_s4 = scalar_lea.vmem %s92_s15, 512  ;;  %p2192_p6 = scmp.lt.s32.totalorder %s92_s15, %s92_s15 }
  0x2f   :  { %p2188_p5 = scmp.ne.s32.totalorder %s92_s15, %s2187_s4  ;;  %p2193_p7 = scmp.lt.s32.totalorder %s2187_s4, %s2187_s4 }
  0x31   :  { %p2194_p8 = por %p2193_p7, %p2192_p6 }
  0x33   :  { %p2195_p9 = pnand %p2194_p8, %p2188_p5 }
  0x35   :  { %2198 = shalt.err (!%p2195_p9)
}
  0x36   :  { %97 = dma.hbm_to_vmem [thread:$0]  %s2854_s8, 512, %s92_s15, [#allocation12], %s2320_s13, %s2320_s13, %s2321_s14  }
  0x37   :  { %s2199_s30 = scalar_lea.hbm %s2846_s0, 32 }
  0x38   :  { %p2200_p10 = scmp.ne.s32.totalorder %s2846_s0, %s2199_s30  ;;  %p2203_p11 = scmp.lt.u32.totalorder %s2199_s30, %s2846_s0 }
  0x3a   :  { %p2205_p12 = pnand %p2203_p11, %p2200_p10 }
  0x3c   :  { %2208 = shalt.err (!%p2205_p12)
}
  0x3d   :  { %s2209_s23 = scalar_lea.vmem %s29_s17, 32  ;;  %p2214_p0 = scmp.lt.s32.totalorder %s29_s17, %s29_s17 }
  0x3e   :  { %p2210_p13 = scmp.ne.s32.totalorder %s29_s17, %s2209_s23  ;;  %p2215_p1 = scmp.lt.s32.totalorder %s2209_s23, %s2209_s23 }
  0x40   :  { %p2216_p2 = por %p2215_p1, %p2214_p0 }
  0x42   :  { %p2217_p3 = pnand %p2216_p2, %p2210_p13 }
  0x44   :  { %2220 = shalt.err (!%p2217_p3)
}
  0x45   :  { %31 = dma.hbm_to_vmem [thread:$0]  %s2846_s0, 32, %s29_s17, [#allocation3]  }
  0x46   :  { %s2327_s24 = smov [#allocation7]   ;;  %s2328_s26 = smov [#allocation10]  }
  0x47   :  { %s49_s25 = sshll.u32 %s2327_s24, 4  ;;  %s77_s4 = sshll.u32 %s2328_s26, 4  ;;  %s50_s25 = int_to_ptr.vmem [resolvable:$true] %s49_s25  ;;  %s2471_s4 = int_to_ptr.vmem [resolvable:$true] %s77_s4 }
  0x48   :  { %s2221_s28 = scalar_lea.hbm %s2848_s2, 256 }
  0x49   :  { %p2222_p4 = scmp.ne.s32.totalorder %s2848_s2, %s2221_s28  ;;  %p2225_p5 = scmp.lt.u32.totalorder %s2221_s28, %s2848_s2 }
  0x4b   :  { %p2227_p6 = pnand %p2225_p5, %p2222_p4 }
  0x4d   :  { %2230 = shalt.err (!%p2227_p6)
}
  0x4e   :  { %s2231_s0 = scalar_lea.vmem %s50_s25, 256  ;;  %p2236_p8 = scmp.lt.s32.totalorder %s50_s25, %s50_s25 }
  0x4f   :  { %p2232_p7 = scmp.ne.s32.totalorder %s50_s25, %s2231_s0  ;;  %p2237_p9 = scmp.lt.s32.totalorder %s2231_s0, %s2231_s0 }
  0x51   :  { %p2238_p10 = por %p2237_p9, %p2236_p8 }
  0x53   :  { %p2239_p11 = pnand %p2238_p10, %p2232_p7 }
  0x55   :  { %2242 = shalt.err (!%p2239_p11)
}
  0x56   :  { %55 = dma.hbm_to_vmem [thread:$0]  %s2848_s2, 256, %s50_s25, [#allocation6], %s2320_s13, %s2320_s13, %s2321_s14  }
  0x57   :  { %s2243_s8 = scalar_lea.hbm %s2852_s6, 2048 }
  0x58   :  { %p2244_p12 = scmp.ne.s32.totalorder %s2852_s6, %s2243_s8  ;;  %p2247_p13 = scmp.lt.u32.totalorder %s2243_s8, %s2852_s6 }
  0x5a   :  { %p2249_p0 = pnand %p2247_p13, %p2244_p12 }
  0x5c   :  { %2252 = shalt.err (!%p2249_p0)
}
  0x5d   :  { %s2253_s27 = scalar_lea.vmem %s2471_s4, 2048  ;;  %p2258_p2 = scmp.lt.s32.totalorder %s2471_s4, %s2471_s4 }
  0x5e   :  { %p2254_p1 = scmp.ne.s32.totalorder %s2471_s4, %s2253_s27  ;;  %p2259_p3 = scmp.lt.s32.totalorder %s2253_s27, %s2253_s27 }
  0x60   :  { %p2260_p4 = por %p2259_p3, %p2258_p2 }
  0x62   :  { %p2261_p5 = pnand %p2260_p4, %p2254_p1 }
  0x64   :  { %2264 = shalt.err (!%p2261_p5)
}
  0x65   :  { %83 = dma.hbm_to_vmem [thread:$0]  %s2852_s6, 2048, %s2471_s4, [#allocation9], %s2323_s1, %s2323_s1, %s2324_s22  }
  0x66   :  { %s2329_s28 = smov [#allocation13]   ;;  %s2265_s19 = scalar_lea.hbm %s2855_s9, 16 }
  0x67   :  { %s104_s29 = sshll.u32 %s2329_s28, 4  ;;  %p2266_p6 = scmp.ne.s32.totalorder %s2855_s9, %s2265_s19  ;;  %s105_s29 = int_to_ptr.vmem [resolvable:$true] %s104_s29 }
  0x68   :  { %p2269_p7 = scmp.lt.u32.totalorder %s2265_s19, %s2855_s9 }
  0x6a   :  { %p2271_p8 = pnand %p2269_p7, %p2266_p6 }
  0x6c   :  { %2274 = shalt.err (!%p2271_p8)
}
  0x6d   :  { %s2275_s23 = scalar_lea.vmem %s105_s29, 16  ;;  %s2279_s6 = scalar_lea.vmem %s105_s29, 32 }
  0x6e   :  { %p2276_p9 = scmp.ne.s32.totalorder %s105_s29, %s2275_s23  ;;  %p2280_p10 = scmp.lt.s32.totalorder %s105_s29, %s105_s29 }
  0x6f   :  { %p2281_p11 = scmp.lt.s32.totalorder %s2279_s6, %s2275_s23 }
  0x71   :  { %p2282_p12 = por %p2281_p11, %p2280_p10 }
  0x73   :  { %p2283_p13 = pnand %p2282_p12, %p2276_p9 }
  0x75   :  { %2286 = shalt.err (!%p2283_p13)
}
  0x76   :  { %107 = dma.hbm_to_vmem [thread:$0]  %s2855_s9, 16, %s105_s29, [#allocation12]  }
  0x77   :  { %2309 = dma.done.wait [#allocation3], 32  }
  0x78   :  { %2310 = vsyncadd [#allocation3], 4294967264 }
  0x79   :  { %2311 = dma.done.wait [#allocation6], 512  }
  0x7a   :  { %2312 = vsyncadd [#allocation6], 4294966784 }
  0x7b   :  { %2313 = dma.done.wait [#allocation9], 4096  }
  0x7c   :  { %2314 = vsyncadd [#allocation9], 4294963200 }
  0x7d   :  { %2315 = dma.done.wait [#allocation12], 528  }
  0x7e   :  { %2316 = vsyncadd [#allocation12], 4294966768  ;;  %v2330_v0 = vmov 0.0|0.0   ;;  %vm2331_vm0 = vmmov 0   ;;  %v2332_v1 = vmov 0.0   ;;  %v134_v2 = vld [vmem:[#allocation7] sm:$0xff] }
  0x7f   :  { %1998 = vmatprep.subr.bf16.mxu0 %v2330_v0  ;;  %1911 = vmatprep.mubr.msk.f32.mxu0 %vm2331_vm0, %v2332_v1  ;;  %v135_v3 = vld [vmem:[#allocation7 + $0x8] sm:$0xff]  ;;  %v219_v6 = vld [vmem:[#allocation8 + $0x8] sm:$0xff]  ;;  %v218_v8 = vld [vmem:[#allocation8] sm:$0xff]  ;;  %vm143_vm1 = vcmask 130048   ;;  %v2333_v31 = vmov 1   ;;  %v2334_v33 = vmov 2  }
  0x80   :  { %314 = vmatprep.mubr.f32.mxu1 %v2332_v1  ;;  %v1999_v4 = vpack.c.bf16 %v135_v3, %v134_v2  ;;  %v133_v5 = vld [vmem:[#allocation2] sm:$0x3]  ;;  %v220_v10 = vld [vmem:[#allocation8 + $0x10] sm:$0xff]  ;;  %v223_v11 = vld [vmem:[#allocation8 + $0x28] sm:$0xff]  ;;  %2088 = vset.pattern.permute.xlu1 %v2333_v31  ;;  %v2335_v34 = vmov 3   ;;  %v2336_v35 = vmov 5  }
  0x81   :  { %v221_v7 = vld [vmem:[#allocation8 + $0x18] sm:$0xff]  ;;  %v2003_v13 = vpack.c.bf16 %v220_v10, %v218_v8  ;;  %v222_v15 = vld [vmem:[#allocation8 + $0x20] sm:$0xff]  ;;  %v224_v16 = vld [vmem:[#allocation8 + $0x30] sm:$0xff]  ;;  %2087 = vset.pattern.permute.xlu0 %v2333_v31  ;;  %v2337_v39 = vmov 6   ;;  %v2338_v60 = vmov 7   ;;  %v2339_v62 = vmov 0  }
  0x82   :  { %v2001_v9 = vpack.c.bf16 %v221_v7, %v219_v6  ;;  %v225_v12 = vld [vmem:[#allocation8 + $0x38] sm:$0xff]  ;;  %2000 = vmatpush3.bf16.msra.mxu0 %v1999_v4  ;;  %v227_v17 = vld [vmem:[#allocation8 + $0x48] sm:$0xff]  ;;  %v2007_v19 = vpack.c.bf16 %v224_v16, %v222_v15  ;;  %v226_v21 = vld [vmem:[#allocation8 + $0x40] sm:$0xff]  ;;  %v2340_v63 = vmov 4   ;;  %vm246_vm2 = vcmask 523264   ;;  %s2341_s8 = smov 64  }
  0x83   :  { %v2005_v14 = vpack.c.bf16 %v225_v12, %v223_v11  ;;  %v229_v18 = vld [vmem:[#allocation8 + $0x58] sm:$0xff]  ;;  %v228_v22 = vld [vmem:[#allocation8 + $0x50] sm:$0xff]  ;;  %v231_v24 = vld [vmem:[#allocation8 + $0x68] sm:$0xff]  ;;  %v236_v8 = vlaneseq  ;;  %v2342_v11 = vmov 1966171168   ;;  %s2344_s24 = smov 32  }
  0x84   :  { %2002 = vmatprep.subr.bf16.mxu1 %v2001_v9  ;;  %v2009_v20 = vpack.c.bf16 %v229_v18, %v227_v17  ;;  %v2011_v23 = vpack.c.bf16 %v228_v22, %v226_v21  ;;  %v233_v25 = vld [vmem:[#allocation8 + $0x78] sm:$0xff]  ;;  %v230_v27 = vld [vmem:[#allocation8 + $0x60] sm:$0xff]  ;;  %v232_v28 = vld [vmem:[#allocation8 + $0x70] sm:$0xff]  ;;  %v428_v12 = vunpack.c.l.s4 %v2342_v11  ;;  %vm795_vm3 = vcmask 261120   ;;  %s2346_s19 = smov 112   ;;  %s2348_s20 = smov [#allocation14]  }
  0x85   :  { %2004 = vmatpush1.bf16.msra.mxu1 %v2003_v13  ;;  %1912 = vmatmul.mubr.msk.f32.vlgmr.msra.gmra.mrb[0].mxu0 %vm143_vm1, %v133_v5  ;;  %v2013_v26 = vpack.c.bf16 %v233_v25, %v231_v24  ;;  %v2015_v29 = vpack.c.bf16 %v232_v28, %v230_v27  ;;  %v2526_v30 = vld [vmem:[#allocation5 + $0x8] sm:$0xff]  ;;  %v2529_v32 = vld [vmem:[#allocation5] sm:$0xff]  ;;  %v324_v37 = vld [vmem:[#allocation10 + $0x18] sm:$0xff]  ;;  %v2561_v10 = vshrl.u32 %v236_v8, 7  ;;  %vm1125_vm4 = vcmask 64512   ;;  %s1827_s21 = sshll.u32 %s2348_s20, 4  ;;  %s1828_s21 = int_to_ptr.vmem [resolvable:$true] %s1827_s21 }
  0x86   :  { %2006 = vmatprep.subr.bf16.mxu1 %v2005_v14  ;;  %417 = vmatprep.mubr.f32.mxu0 %v2332_v1  ;;  %v322_v36 = vld [vmem:[#allocation10 + $0x8] sm:$0xff]  ;;  %v321_v38 = vld [vmem:[#allocation10] sm:$0xff]  ;;  %v323_v41 = vld [vmem:[#allocation10 + $0x10] sm:$0xff]  ;;  %v429_v16 = vunpack.c.0.s8 %v428_v12  ;;  %s2287_s23 = scalar_lea.vmem %s1828_s21, 256  ;;  %p2292_p1 = scmp.lt.s32.totalorder %s1828_s21, %s1828_s21 }
  0x87   :  { %511 = vperm.xlu1 %2088, %v2526_v30   ;;  %v2017_v40 = vpack.c.bf16 %v324_v37, %v322_v36  ;;  %v326_v42 = vld [vmem:[#allocation10 + $0x28] sm:$0xff]  ;;  %v328_v43 = vld [vmem:[#allocation10 + $0x38] sm:$0xff]  ;;  %v2019_v44 = vpack.c.bf16 %v323_v41, %v321_v38  ;;  %v325_v46 = vld [vmem:[#allocation10 + $0x20] sm:$0xff]  ;;  %v2564_v13 = vsub.s32 0, %v2561_v10  ;;  %v242_v17 = vsub.s32 1, %v2561_v10  ;;  %p2288_p0 = scmp.ne.s32.totalorder %s1828_s21, %s2287_s23  ;;  %p2293_p2 = scmp.lt.s32.totalorder %s2287_s23, %s2287_s23 }
  0x88   :  { %v2021_v45 = vpack.c.bf16 %v328_v43, %v326_v42  ;;  %v327_v47 = vld [vmem:[#allocation10 + $0x30] sm:$0xff]  ;;  %v330_v48 = vld [vmem:[#allocation10 + $0x48] sm:$0xff]  ;;  %v332_v49 = vld [vmem:[#allocation10 + $0x58] sm:$0xff] }
  0x89   :  { %2008 = vmatpush1.bf16.msra.mxu1 %v2007_v19  ;;  %2018 = vmatprep.subr.bf16.mxu0 %v2017_v40  ;;  %v2023_v50 = vpack.c.bf16 %v327_v47, %v325_v46  ;;  %v2025_v51 = vpack.c.bf16 %v332_v49, %v330_v48  ;;  %v329_v52 = vld [vmem:[#allocation10 + $0x40] sm:$0xff]  ;;  %v331_v53 = vld [vmem:[#allocation10 + $0x50] sm:$0xff]  ;;  %v334_v54 = vld [vmem:[#allocation10 + $0x68] sm:$0xff]  ;;  %v2574_v19 = vsub.s32 %v429_v16, %v2561_v10  ;;  %p2294_p3 = por %p2293_p2, %p2292_p1 }
  0x8a   :  { %2010 = vmatprep.subr.bf16.mxu1 %v2009_v20  ;;  %2020 = vmatpush1.bf16.msra.mxu0 %v2019_v44  ;;  %v336_v55 = vld [vmem:[#allocation10 + $0x78] sm:$0xff]  ;;  %v2027_v56 = vpack.c.bf16 %v331_v53, %v329_v52  ;;  %v333_v58 = vld [vmem:[#allocation10 + $0x60] sm:$0xff]  ;;  %v335_v59 = vld [vmem:[#allocation10 + $0x70] sm:$0xff] }
  0x8b   :  { %2089 = vset.pattern.permute.xlu1 %v2334_v33  ;;  %2022 = vmatprep.subr.bf16.mxu0 %v2021_v45  ;;  %v2029_v57 = vpack.c.bf16 %v336_v55, %v334_v54  ;;  %v2031_v61 = vpack.c.bf16 %v335_v59, %v333_v58  ;;  %v1842_v2 = vld [vmem:[%s2849_s3] ss:$0 sm:$0xff]  ;;  %v781_v40 = vld [vmem:[#allocation11 + $0x8] sm:$0xff]  ;;  %v782_v47 = vld [vmem:[#allocation11 + $0x10] sm:$0xff]  ;;  %p2295_p4 = pnand %p2294_p3, %p2288_p0 }
  0x8c   :  { %539 = vperm.xlu1 %2089, %v2529_v32   ;;  %v234_v15 = vld [vmem:[%s2851_s5] sm:$0x3]  ;;  %s2343_s5 = smov 96  }
  0x8d   :  { %2012 = vmatpush1.bf16.msra.mxu1 %v2011_v23  ;;  %v239_v18 = vrot.slane %v234_v15, %v2564_v13  ;;  %v243_v20 = vrot.slane %v234_v15, %v242_v17  ;;  %v783_v48 = vld [vmem:[#allocation11 + $0x18] sm:$0xff] }
  0x8e   :  { %2014 = vmatprep.subr.bf16.mxu1 %v2013_v26  ;;  %2024 = vmatpush1.bf16.msra.mxu0 %v2023_v50 }
  0x8f   :  { %2026 = vmatprep.subr.bf16.mxu0 %v2025_v51  ;;  %v2037_v51 = vpack.c.bf16 %v783_v48, %v782_v47 }
  0x90   :  { %543 = vperm.xlu1 %2089, %v2526_v30  }
  0x91   :  { %2016 = vmatpush1.bf16.msra.mxu1 %v2015_v29 }
  0x92   :  { %2033 = vmatprep.subr.bf16.mxu1 %v2330_v0  ;;  %2028 = vmatpush1.bf16.msra.mxu0 %v2027_v56 }
  0x93   :  { %2030 = vmatprep.subr.bf16.mxu0 %v2029_v57 }
  0x94   :  { %2091 = vset.pattern.permute.xlu1 %v2335_v34 }
  0x95   :  { %575 = vperm.xlu1 %2091, %v2526_v30  }
  0x96   :  { %2032 = vmatpush1.bf16.msra.mxu0 %v2031_v61 }
  0x97   :  { %2039 = vmatprep.subr.bf16.mxu0 %v2330_v0 }
  0x99   :  { %2092 = vset.pattern.permute.xlu1 %v2336_v35 }
  0x9a   :  { %685 = vperm.xlu1 %2092, %v2529_v32  }
  0x9e   :  { %2094 = vset.pattern.permute.xlu1 %v2337_v39  ;;  %v780_v39 = vld [vmem:[#allocation11] sm:$0xff] }
  0x9f   :  { %717 = vperm.xlu1 %2094, %v2529_v32   ;;  %v2034_v43 = vpack.c.bf16 %v781_v40, %v780_v39 }
  0xa3   :  { %721 = vperm.xlu1 %2094, %v2526_v30  }
  0xa7   :  { %2096 = vset.pattern.permute.xlu1 %v2338_v60 }
  0xa8   :  { %753 = vperm.xlu1 %2096, %v2526_v30  }
  0xac   :  { %2097 = vset.pattern.permute.xlu1 %v2339_v62 }
  0xad   :  { %451 = vperm.xlu1 %2097, %v2529_v32  }
  0xb1   :  { %2099 = vset.pattern.permute.xlu1 %v2340_v63 }
  0xb2   :  { %626 = vperm.xlu1 %2099, %v2529_v32  }
  0xb6   :  { %630 = vperm.xlu1 %2099, %v2526_v30  }
 0x106   :  { %v2559_v9 = vpop.permute.xlu1 %511 }
 0x10b   :  { %v2566_v14 = vpop.permute.xlu1 %539 }
 0x10f   :  { %v2578_v21 = vpop.permute.xlu1 %543 }
 0x114   :  { %v2582_v29 = vpop.permute.xlu1 %575 }
 0x119   :  { %v2599_v38 = vpop.permute.xlu1 %685 }
 0x11e   :  { %v2619_v52 = vpop.permute.xlu1 %717 }
 0x122   :  { %v2637_v58 = vpop.permute.xlu1 %721 }
 0x127   :  { %v2650_v63 = vpop.permute.xlu1 %753 }
 0x158   :  { %v213_v3 = vpop.f32.mrb[0].mxu0 }
 0x159   :  { %v214_v4 = vadd.f32 %v1842_v2, %v213_v3  ;;  %v1913_v5 = vpop.f32.mrb[1].mxu0  ;;  %v337_v3 = vld [vmem:[%s2853_s7] sm:$0x3] }
 0x15a   :  { %v342_v5 = vrot.slane %v337_v3, %v2564_v13 }
 0x15b   :  { %v217_v6 = vmax.f32 %v214_v4, 0.0  ;;  %v2659_v4 = vpop.permute.xlu1 %451 }
 0x15d   :  { %349 = vrot.lane.b32.xlu0 %v217_v6, %s2341_s8  ;;  %1844 = vmatmul.mubr.msk.f32.vlgmr.msra.gmra.mrb[0].mxu1 %vm246_vm2, %v217_v6  ;;  %v346_v6 = vrot.slane %v337_v3, %v242_v17 }
 0x15e   :  { %1922 = vmatprep.mubr.msk.f32.mxu1 %vm2331_vm0, %v2332_v1  ;;  %2035 = vmatpush3.bf16.msra.mxu1 %v2034_v43 }
 0x15f   :  { %2036 = vmatprep.subr.bf16.mxu1 %v2330_v0  ;;  %v2664_v12 = vpop.permute.xlu1 %626 }
 0x161   :  { %507 = vperm.xlu0 %2087, %v2529_v32  }
 0x162   :  { %2038 = vmatpush3.bf16.msra.mxu1 %v2037_v51 }
 0x163   :  { %2045 = vmatprep.subr.bf16.mxu1 %v2330_v0  ;;  %v2675_v17 = vpop.permute.xlu1 %630 }
 0x165   :  { %2090 = vset.pattern.permute.xlu0 %v2335_v34 }
 0x166   :  { %571 = vperm.xlu0 %2090, %v2529_v32  }
 0x16a   :  { %2093 = vset.pattern.permute.xlu0 %v2336_v35 }
 0x16b   :  { %689 = vperm.xlu0 %2093, %v2526_v30  }
 0x16f   :  { %2095 = vset.pattern.permute.xlu0 %v2338_v60 }
 0x170   :  { %749 = vperm.xlu0 %2095, %v2529_v32  }
 0x174   :  { %2098 = vset.pattern.permute.xlu0 %v2339_v62 }
 0x175   :  { %456 = vperm.xlu0 %2098, %v2526_v30  }
 0x179   :  { %2100 = vset.pattern.permute.xlu0 %v2338_v60 }
 0x1cf   :  { %v350_v7 = vpop.permute.xlu0 %349 }
 0x1d0   :  { %1845 = vmatmul.mubr.msk.f32.vlgmr.msra.gmra.mrb[2].mxu0 %vm246_vm2, %v350_v7 }
 0x1d1   :  { %1933 = vmatprep.mubr.msk.f32.mxu0 %vm2331_vm0, %v2332_v1  ;;  %2041 = vmatpush3.bf16.msra.mxu0 %v2034_v43 }
 0x1d2   :  { %2042 = vmatprep.subr.bf16.mxu0 %v2330_v0 }
 0x1d5   :  { %2044 = vmatpush3.bf16.msra.mxu0 %v2037_v51 }
 0x1d6   :  { %2051 = vmatprep.subr.bf16.mxu0 %v2330_v0 }
 0x1e0   :  { %v2589_v33 = vpop.permute.xlu0 %507 }
 0x1e5   :  { %v2609_v46 = vpop.permute.xlu0 %571 }
 0x1ea   :  { %v2632_v56 = vpop.permute.xlu0 %689 }
 0x1ef   :  { %v2645_v61 = vpop.permute.xlu0 %749 }
 0x230   :  { %v316_v22 = vpop.f32.mrb[0].mxu1 }
 0x231   :  { %v317_v23 = vadd.f32 %v316_v22, %v239_v18  ;;  %v318_v24 = vpop.f32.mrb[1].mxu1  ;;  %v2668_v22 = vpop.permute.xlu0 %456 }
 0x232   :  { %v319_v26 = vadd.f32 %v318_v24, %v243_v20 }
 0x233   :  { %v433_v25 = vrot.slane %v317_v23, %v2574_v19 }
 0x234   :  { %v609_v32 = vrot.slane %v319_v26, %v2574_v19 }
 0x235   :  { %v434_v27 = vcombine.high %v433_v25, %v433_v25  ;;  %v441_v28 = vrot.slane %v433_v25, %v2574_v19 }
 0x236   :  { %v610_v36 = vcombine.high %v609_v32, %v609_v32  ;;  %v617_v41 = vrot.slane %v609_v32, %v2574_v19 }
 0x237   :  { %v448_v30 = vrot.slane %v434_v27, %v2574_v19  ;;  %v2586_v31 = vrot.slane %v441_v28, %v2564_v13 }
 0x238   :  { %v624_v44 = vrot.slane %v610_v36, %v2574_v19  ;;  %v2613_v49 = vrot.slane %v617_v41, %v2564_v13 }
 0x239   :  { %v2592_v34 = vrot.slane %v448_v30, %v2564_v13  ;;  %v514_v35 = vmul.f32 %v2589_v33, %v2586_v31  ;;  %v546_v42 = vmul.f32 %v2566_v14, %v2586_v31  ;;  %v578_v50 = vmul.f32 %v2609_v46, %v2586_v31 }
 0x23a   :  { %v2622_v53 = vrot.slane %v624_v44, %v2564_v13  ;;  %v692_v55 = vmul.f32 %v2599_v38, %v2613_v49  ;;  %v724_v59 = vmul.f32 %v2619_v52, %v2613_v49  ;;  %v756_v62 = vmul.f32 %v2645_v61, %v2613_v49 }
 0x23b   :  { %518 = vrot.lane.b32.xlu0 %v514_v35, %s2343_s5  ;;  %v515_v37 = vmul.f32 %v2559_v9, %v2592_v34  ;;  %v547_v45 = vmul.f32 %v2578_v21, %v2592_v34  ;;  %v579_v54 = vmul.f32 %v2582_v29, %v2592_v34  ;;  %v469_v35 = vmul.f32 %v2586_v31, %v2659_v4 }
 0x23c   :  { %v693_v57 = vmul.f32 %v2632_v56, %v2622_v53  ;;  %v725_v60 = vmul.f32 %v2637_v58, %v2622_v53  ;;  %v757_v2 = vmul.f32 %v2650_v63, %v2622_v53  ;;  %v644_v51 = vmul.f32 %v2622_v53, %v2675_v17 }
 0x23d   :  { %520 = vrot.lane.b32.xlu1 %v515_v37, %s2343_s5 }
 0x23f   :  { %550 = vrot.lane.b32.xlu0 %v546_v42, %s2341_s8 }
 0x241   :  { %552 = vrot.lane.b32.xlu1 %v547_v45, %s2341_s8 }
 0x243   :  { %582 = vrot.lane.b32.xlu0 %v578_v50, %s2344_s24 }
 0x245   :  { %584 = vrot.lane.b32.xlu1 %v579_v54, %s2344_s24 }
 0x247   :  { %696 = vrot.lane.b32.xlu0 %v692_v55, %s2343_s5 }
 0x249   :  { %698 = vrot.lane.b32.xlu1 %v693_v57, %s2343_s5 }
 0x24b   :  { %728 = vrot.lane.b32.xlu0 %v724_v59, %s2341_s8 }
 0x24d   :  { %730 = vrot.lane.b32.xlu1 %v725_v60, %s2341_s8 }
 0x24f   :  { %760 = vrot.lane.b32.xlu0 %v756_v62, %s2344_s24  ;;  %v784_v62 = vld [vmem:[%s2856_s10] sm:$0xff] }
 0x251   :  { %762 = vrot.lane.b32.xlu1 %v757_v2, %s2344_s24 }
 0x2a3   :  { %v419_v7 = vpop.f32.mrb[2].mxu0 }
 0x2a4   :  { %v420_v8 = vadd.f32 %v419_v7, %v342_v5  ;;  %v421_v11 = vpop.f32.mrb[3].mxu0 }
 0x2a5   :  { %v422_v16 = vadd.f32 %v421_v11, %v346_v6 }
 0x2a6   :  { %v478_v15 = vrot.slane %v420_v8, %v2574_v19 }
 0x2a7   :  { %v654_v10 = vrot.slane %v422_v16, %v2574_v19  ;;  %v787_v16 = vld [vmem:[%s2856_s10 + $0x18] sm:$0xff] }
 0x2a8   :  { %v479_v18 = vcombine.high %v478_v15, %v478_v15  ;;  %v486_v20 = vrot.slane %v478_v15, %v2574_v19  ;;  %v786_v15 = vld [vmem:[%s2856_s10 + $0x10] sm:$0xff] }
 0x2a9   :  { %v655_v28 = vcombine.high %v654_v10, %v654_v10  ;;  %v662_v36 = vrot.slane %v654_v10, %v2574_v19 }
 0x2aa   :  { %v493_v23 = vrot.slane %v479_v18, %v2574_v19  ;;  %v2672_v24 = vrot.slane %v486_v20, %v2564_v13  ;;  %v2049_v20 = vpack.c.bf16 %v787_v16, %v786_v15 }
 0x2ab   :  { %v669_v40 = vrot.slane %v655_v28, %v2574_v19  ;;  %v2698_v42 = vrot.slane %v662_v36, %v2564_v13  ;;  %v643_v19 = vmul.f32 %v2613_v49, %v2664_v12 }
 0x2ac   :  { %v2678_v25 = vrot.slane %v493_v23, %v2564_v13  ;;  %v526_v26 = vmul.f32 %v2589_v33, %v2672_v24  ;;  %v558_v37 = vmul.f32 %v2566_v14, %v2672_v24  ;;  %v470_v33 = vmul.f32 %v2592_v34, %v2668_v22 }
 0x2ad   :  { %v519_v27 = vpop.permute.xlu0 %518  ;;  %v590_v14 = vmul.f32 %v2609_v46, %v2672_v24  ;;  %v2706_v45 = vrot.slane %v669_v40, %v2564_v13  ;;  %v704_v49 = vmul.f32 %v2599_v38, %v2698_v42  ;;  %v504_v10 = vmul.f32 %v2672_v24, %v2659_v4 }
 0x2ae   :  { %530 = vrot.lane.b32.xlu0 %v526_v26, %s2343_s5  ;;  %v527_v30 = vmul.f32 %v2559_v9, %v2678_v25  ;;  %v524_v41 = vadd.f32 %v519_v27, %v469_v35  ;;  %v559_v9 = vmul.f32 %v2578_v21, %v2678_v25  ;;  %v591_v48 = vmul.f32 %v2582_v29, %v2678_v25 }
 0x2af   :  { %v521_v32 = vpop.permute.xlu1 %520  ;;  %v705_v57 = vmul.f32 %v2632_v56, %v2706_v45  ;;  %v736_v29 = vmul.f32 %v2619_v52, %v2698_v42  ;;  %v737_v38 = vmul.f32 %v2637_v58, %v2706_v45  ;;  %v785_v56 = vld [vmem:[%s2856_s10 + $0x8] sm:$0xff]  ;;  %v768_v52 = vmul.f32 %v2645_v61, %v2698_v42  ;;  %s2345_s10 = smov 120  }
 0x2b0   :  { %532 = vrot.lane.b32.xlu1 %v527_v30, %s2343_s5  ;;  %v525_v43 = vadd.f32 %v521_v32, %v470_v33  ;;  %v2046_v7 = vpack.c.bf16 %v785_v56, %v784_v62  ;;  %v769_v11 = vmul.f32 %v2650_v63, %v2706_v45  ;;  %v505_v28 = vmul.f32 %v2678_v25, %v2668_v22 }
 0x2b1   :  { %v551_v39 = vpop.permute.xlu0 %550  ;;  %v681_v4 = vmul.f32 %v2706_v45, %v2675_v17 }
 0x2b2   :  { %562 = vrot.lane.b32.xlu0 %v558_v37, %s2341_s8  ;;  %v556_v44 = vadd.f32 %v551_v39, %v524_v41  ;;  %v680_v39 = vmul.f32 %v2698_v42, %v2664_v12  ;;  %v1846_v12 = vld [vmem:[#allocation13] ss:$0 sm:$0xff] }
 0x2b3   :  { %v553_v31 = vpop.permute.xlu1 %552 }
 0x2b4   :  { %564 = vrot.lane.b32.xlu1 %v559_v9, %s2341_s8  ;;  %v557_v47 = vadd.f32 %v553_v31, %v525_v43 }
 0x2b5   :  { %v583_v34 = vpop.permute.xlu0 %582 }
 0x2b6   :  { %v588_v21 = vadd.f32 %v583_v34, %v556_v44  ;;  %594 = vrot.lane.b32.xlu0 %v590_v14, %s2344_s24 }
 0x2b7   :  { %v585_v50 = vpop.permute.xlu1 %584 }
 0x2b8   :  { %v589_v54 = vadd.f32 %v585_v50, %v557_v47  ;;  %596 = vrot.lane.b32.xlu1 %v591_v48, %s2344_s24  ;;  %v645_v46 = vadd.f32 %v643_v19, %v588_v21 }
 0x2b9   :  { %v697_v13 = vpop.permute.xlu0 %696 }
 0x2ba   :  { %708 = vrot.lane.b32.xlu0 %v704_v49, %s2343_s5  ;;  %v646_v55 = vadd.f32 %v644_v51, %v589_v54  ;;  %v702_v60 = vadd.f32 %v697_v13, %v645_v46  ;;  %v1849_v13 = vld [vmem:[%s2857_s11] ss:$0 sm:$0xff]  ;;  %s2347_s11 = smov 104  }
 0x2bb   :  { %v699_v59 = vpop.permute.xlu1 %698 }
 0x2bc   :  { %710 = vrot.lane.b32.xlu1 %v705_v57, %s2343_s5  ;;  %v703_v3 = vadd.f32 %v699_v59, %v646_v55 }
 0x2bd   :  { %v729_v53 = vpop.permute.xlu0 %728 }
 0x2be   :  { %740 = vrot.lane.b32.xlu0 %v736_v29, %s2341_s8  ;;  %v734_v5 = vadd.f32 %v729_v53, %v702_v60 }
 0x2bf   :  { %v731_v2 = vpop.permute.xlu1 %730 }
 0x2c0   :  { %742 = vrot.lane.b32.xlu1 %v737_v38, %s2341_s8  ;;  %v735_v58 = vadd.f32 %v731_v2, %v703_v3 }
 0x2c1   :  { %v761_v6 = vpop.permute.xlu0 %760 }
 0x2c2   :  { %v766_v8 = vadd.f32 %v761_v6, %v734_v5  ;;  %772 = vrot.lane.b32.xlu0 %v768_v52, %s2344_s24 }
 0x2c3   :  { %v763_v18 = vpop.permute.xlu1 %762 }
 0x2c4   :  { %v767_v61 = vadd.f32 %v763_v18, %v735_v58  ;;  %1923 = vmatmul.mubr.msk.f32.vlgmr.msra.gmra.mrb[2].mxu1 %vm795_vm3, %v766_v8  ;;  %774 = vrot.lane.b32.xlu1 %v769_v11, %s2344_s24 }
 0x2c5   :  { %2047 = vmatpush3.bf16.msra.mxu1 %v2046_v7  ;;  %1944 = vmatprep.mubr.msk.f32.mxu1 %vm2331_vm0, %v2332_v1 }
 0x2c6   :  { %1934 = vmatmul.mubr.msk.f32.vlgmr.msra.gmra.mrb[4].mxu0 %vm795_vm3, %v767_v61  ;;  %2048 = vmatprep.subr.bf16.mxu1 %v2330_v0 }
 0x2c7   :  { %2053 = vmatpush3.bf16.msra.mxu0 %v2046_v7  ;;  %1955 = vmatprep.mubr.msk.f32.mxu0 %vm2331_vm0, %v2332_v1 }
 0x2c8   :  { %2054 = vmatprep.subr.bf16.mxu0 %v2330_v0 }
 0x2c9   :  { %2050 = vmatpush3.bf16.msra.mxu1 %v2049_v20 }
 0x2ca   :  { %1958 = vmatprep.subr.mxu1 %v2332_v1 }
 0x2cb   :  { %2056 = vmatpush3.bf16.msra.mxu0 %v2049_v20 }
 0x2cc   :  { %1963 = vmatprep.subr.mxu0 %v2332_v1 }
 0x320   :  { %v531_v63 = vpop.permute.xlu0 %530 }
 0x321   :  { %v536_v27 = vadd.f32 %v531_v63, %v504_v10 }
 0x322   :  { %v533_v23 = vpop.permute.xlu1 %532 }
 0x323   :  { %v537_v32 = vadd.f32 %v533_v23, %v505_v28 }
 0x324   :  { %v563_v26 = vpop.permute.xlu0 %562 }
 0x325   :  { %v568_v35 = vadd.f32 %v563_v26, %v536_v27 }
 0x326   :  { %v565_v30 = vpop.permute.xlu1 %564 }
 0x327   :  { %v569_v36 = vadd.f32 %v565_v30, %v537_v32 }
 0x328   :  { %v595_v0 = vpop.permute.xlu0 %594 }
 0x329   :  { %v600_v37 = vadd.f32 %v595_v0, %v568_v35 }
 0x32a   :  { %v597_v33 = vpop.permute.xlu1 %596 }
 0x32b   :  { %v601_v40 = vadd.f32 %v597_v33, %v569_v36  ;;  %v682_v41 = vadd.f32 %v680_v39, %v600_v37 }
 0x32c   :  { %v709_v24 = vpop.permute.xlu0 %708 }
 0x32d   :  { %v683_v9 = vadd.f32 %v681_v4, %v601_v40  ;;  %v714_v22 = vadd.f32 %v709_v24, %v682_v41 }
 0x32e   :  { %v711_v31 = vpop.permute.xlu1 %710 }
 0x32f   :  { %v715_v44 = vadd.f32 %v711_v31, %v683_v9 }
 0x330   :  { %v741_v43 = vpop.permute.xlu0 %740 }
 0x331   :  { %v746_v14 = vadd.f32 %v741_v43, %v714_v22 }
 0x332   :  { %v743_v25 = vpop.permute.xlu1 %742 }
 0x333   :  { %v747_v34 = vadd.f32 %v743_v25, %v715_v44 }
 0x334   :  { %v773_v19 = vpop.permute.xlu0 %772 }
 0x335   :  { %v778_v47 = vadd.f32 %v773_v19, %v746_v14 }
 0x336   :  { %v775_v21 = vpop.permute.xlu1 %774 }
 0x337   :  { %v779_v48 = vadd.f32 %v775_v21, %v747_v34  ;;  %1945 = vmatmul.mubr.msk.f32.vlgmr.msra.gmra.mrb[4].mxu1 %vm795_vm3, %v778_v47 }
 0x338   :  { %1960 = vmatprep.mubr.msk.f32.mxu1 %vm2331_vm0, %v2332_v1 }
 0x339   :  { %1956 = vmatmul.mubr.msk.f32.vlgmr.msra.gmra.mrb[6].mxu0 %vm795_vm3, %v779_v48 }
 0x33a   :  { %1965 = vmatprep.mubr.msk.f32.mxu0 %vm2331_vm0, %v2332_v1 }
 0x397   :  { %v865_v17 = vpop.f32.mrb[2].mxu1 }
 0x398   :  { %v866_v42 = vadd.f32 %v1846_v12, %v865_v17  ;;  %v1924_v45 = vpop.f32.mrb[3].mxu1 }
 0x399   :  { %v938_v50 = vpop.f32.mrb[4].mxu0 }
 0x39a   :  { %v1095_v51 = vmul.f32 0.35355338, %v866_v42  ;;  %v939_v54 = vadd.f32 %v1846_v12, %v938_v50  ;;  %v1935_v46 = vpop.f32.mrb[5].mxu0 }
 0x39c   :  { %v1096_v49 = vmul.f32 0.35355338, %v939_v54  ;;  %1099 = vrot.lane.b32.xlu0 %v1095_v51, %s2345_s10 }
 0x39e   :  { %1101 = vrot.lane.b32.xlu1 %v1096_v49, %s2345_s10 }
 0x3a0   :  { %1103 = vrot.lane.b32.xlu0 %v1095_v51, %s2346_s19 }
 0x3a2   :  { %1105 = vrot.lane.b32.xlu1 %v1096_v49, %s2346_s19 }
 0x40a   :  { %v1018_v55 = vpop.f32.mrb[4].mxu1 }
 0x40b   :  { %v1019_v57 = vadd.f32 %v1849_v13, %v1018_v55  ;;  %v1946_v59 = vpop.f32.mrb[5].mxu1 }
 0x40c   :  { %v1091_v29 = vpop.f32.mrb[6].mxu0 }
 0x40d   :  { %v1092_v53 = vadd.f32 %v1849_v13, %v1091_v29  ;;  %1113 = vrot.lane.b32.xlu0 %v1019_v57, %s2345_s10  ;;  %v1957_v60 = vpop.f32.mrb[7].mxu0  ;;  %1959 = vmatpush3.xpose.msk.msra.mxu1 %vm1125_vm4, %v1019_v57 }
 0x40e   :  { %1968 = vmatprep.subr.mxu1 %v2332_v1  ;;  %v1100_v38 = vpop.permute.xlu0 %1099 }
 0x40f   :  { %1115 = vrot.lane.b32.xlu1 %v1092_v53, %s2345_s10  ;;  %1964 = vmatpush3.xpose.msk.msra.mxu0 %vm1125_vm4, %v1092_v53 }
 0x410   :  { %1961 = vmatmul.mubr.msk.f32.vlgmr.msra.gmra.mrb[6].mxu1 %vm1125_vm4, %v1095_v51  ;;  %1973 = vmatprep.subr.mxu0 %v2332_v1  ;;  %v1102_v62 = vpop.permute.xlu1 %1101 }
 0x411   :  { %1117 = vrot.lane.b32.xlu0 %v1019_v57, %s2346_s19  ;;  %1970 = vmatprep.mubr.msk.f32.mxu1 %vm2331_vm0, %v2332_v1 }
 0x412   :  { %1966 = vmatmul.mubr.msk.f32.vlgmr.msra.gmra.mrb[8].mxu0 %vm1125_vm4, %v1096_v49  ;;  %v1104_v56 = vpop.permute.xlu0 %1103 }
 0x413   :  { %1119 = vrot.lane.b32.xlu1 %v1092_v53, %s2346_s19  ;;  %1975 = vmatprep.mubr.msk.f32.mxu0 %vm2331_vm0, %v2332_v1 }
 0x414   :  { %v1106_v2 = vpop.permute.xlu1 %1105 }
 0x415   :  { %1121 = vrot.lane.b32.xlu0 %v1019_v57, %s2347_s11 }
 0x417   :  { %1123 = vrot.lane.b32.xlu1 %v1092_v53, %s2347_s11 }
 0x419   :  { %1107 = vrot.lane.b32.xlu0 %v1095_v51, %s2347_s11 }
 0x41b   :  { %1109 = vrot.lane.b32.xlu1 %v1096_v49, %s2347_s11 }
 0x47f   :  { %v1114_v3 = vpop.permute.xlu0 %1113 }
 0x480   :  { %1969 = vmatpush3.xpose.msk.msra.mxu1 %vm1125_vm4, %v1114_v3 }
 0x481   :  { %v1116_v5 = vpop.permute.xlu1 %1115  ;;  %1978 = vmatprep.subr.mxu1 %v2332_v1 }
 0x482   :  { %1974 = vmatpush3.xpose.msk.msra.mxu0 %vm1125_vm4, %v1116_v5 }
 0x483   :  { %v1118_v52 = vpop.permute.xlu0 %1117  ;;  %1971 = vmatmul.mubr.msk.f32.vlgmr.msra.gmra.mrb[8].mxu1 %vm1125_vm4, %v1100_v38  ;;  %1983 = vmatprep.subr.mxu0 %v2332_v1 }
 0x484   :  { %1979 = vmatpush3.xpose.msk.msra.mxu1 %vm1125_vm4, %v1118_v52  ;;  %1980 = vmatprep.mubr.msk.f32.mxu1 %vm2331_vm0, %v2332_v1 }
 0x485   :  { %v1120_v6 = vpop.permute.xlu1 %1119  ;;  %1976 = vmatmul.mubr.msk.f32.vlgmr.msra.gmra.mrb[10].mxu0 %vm1125_vm4, %v1102_v62  ;;  %1988 = vmatprep.subr.mxu1 %v2332_v1 }
 0x486   :  { %1984 = vmatpush3.xpose.msk.msra.mxu0 %vm1125_vm4, %v1120_v6  ;;  %1985 = vmatprep.mubr.msk.f32.mxu0 %vm2331_vm0, %v2332_v1 }
 0x487   :  { %v1122_v7 = vpop.permute.xlu0 %1121  ;;  %1981 = vmatmul.mubr.msk.f32.vlgmr.msra.gmra.mrb[10].mxu1 %vm1125_vm4, %v1104_v56  ;;  %1993 = vmatprep.subr.mxu0 %v2332_v1 }
 0x488   :  { %1989 = vmatpush3.xpose.msk.msra.mxu1 %vm1125_vm4, %v1122_v7  ;;  %1990 = vmatprep.mubr.msk.f32.mxu1 %vm2331_vm0, %v2332_v1 }
 0x489   :  { %v1124_v58 = vpop.permute.xlu1 %1123  ;;  %1986 = vmatmul.mubr.msk.f32.vlgmr.msra.gmra.mrb[12].mxu0 %vm1125_vm4, %v1106_v2 }
 0x48a   :  { %1994 = vmatpush3.xpose.msk.msra.mxu0 %vm1125_vm4, %v1124_v58  ;;  %1995 = vmatprep.mubr.msk.f32.mxu0 %vm2331_vm0, %v2332_v1 }
 0x48b   :  { %v1108_v8 = vpop.permute.xlu0 %1107 }
 0x48c   :  { %1991 = vmatmul.mubr.msk.f32.vlgmr.msra.gmra.mrb[12].mxu1 %vm1125_vm4, %v1108_v8 }
 0x48d   :  { %v1110_v11 = vpop.permute.xlu1 %1109 }
 0x48e   :  { %1996 = vmatmul.mubr.msk.f32.vlgmr.msra.gmra.mrb[14].mxu0 %vm1125_vm4, %v1110_v11 }
 0x4e3   :  { %v1196_v15 = vpop.f32.mrb[6].mxu1 }
 0x4e4   :  { %v1962_v16 = vpop.f32.mrb[7].mxu1  ;;  %v1718_v18 = vsel %vm1125_vm4, %v1196_v15, -inf }
 0x4e5   :  { %1719 = vmax.xlane.f32.xlu0 %v1718_v18  ;;  %v1270_v61 = vpop.f32.mrb[8].mxu0 }
 0x4e6   :  { %v1967_v20 = vpop.f32.mrb[9].mxu0  ;;  %v1721_v63 = vsel %vm1125_vm4, %v1270_v61, -inf }
 0x4e7   :  { %1722 = vmax.xlane.f32.xlu1 %v1721_v63 }
 0x556   :  { %v1344_v23 = vpop.f32.mrb[8].mxu1 }
 0x557   :  { %v1972_v10 = vpop.f32.mrb[9].mxu1  ;;  %v1724_v1 = vsel %vm1125_vm4, %v1344_v23, -inf }
 0x558   :  { %1725 = vmax.xlane.f32.xlu0 %v1724_v1  ;;  %v1418_v26 = vpop.f32.mrb[10].mxu0 }
 0x559   :  { %v1977_v27 = vpop.f32.mrb[11].mxu0  ;;  %v1727_v35 = vsel %vm1125_vm4, %v1418_v26, -inf }
 0x55a   :  { %v1492_v28 = vpop.f32.mrb[10].mxu1 }
 0x55b   :  { %v1982_v30 = vpop.f32.mrb[11].mxu1  ;;  %v1730_v32 = vsel %vm1125_vm4, %v1492_v28, -inf }
 0x55c   :  { %1731 = vmax.xlane.f32.xlu1 %v1730_v32  ;;  %1728 = vmax.xlane.f32.xlu0 %v1727_v35  ;;  %v1566_v0 = vpop.f32.mrb[12].mxu0 }
 0x55d   :  { %v1987_v36 = vpop.f32.mrb[13].mxu0  ;;  %v1733_v39 = vsel %vm1125_vm4, %v1566_v0, -inf }
 0x55f   :  { %v1640_v37 = vpop.f32.mrb[12].mxu1 }
 0x560   :  { %v1992_v33 = vpop.f32.mrb[13].mxu1  ;;  %1734 = vmax.xlane.f32.xlu0 %v1733_v39  ;;  %v1736_v40 = vsel %vm1125_vm4, %v1640_v37, -inf }
 0x561   :  { %1737 = vmax.xlane.f32.xlu1 %v1736_v40  ;;  %v1714_v41 = vpop.f32.mrb[14].mxu0 }
 0x562   :  { %v1997_v4 = vpop.f32.mrb[15].mxu0  ;;  %v1739_v24 = vsel %vm1125_vm4, %v1714_v41, -inf }
 0x564   :  { %1740 = vmax.xlane.f32.xlu0 %v1739_v24 }
 0x572   :  { %v1720_v9 = vpop.xlane.xlu0 %1719 }
 0x573   :  { %v1742_v31 = vsub.f32 %v1196_v15, %v1720_v9 }
 0x574   :  { %v1723_v43 = vpop.xlane.xlu1 %1722 }
 0x575   :  { %v1750_v22 = vmul.f32 1.442695, %v1742_v31  ;;  %v1743_v25 = vsub.f32 %v1270_v61, %v1723_v43 }
 0x577   :  { %2101 = vpow2.f32 %v1750_v22  ;;  %v1752_v44 = vmul.f32 1.442695, %v1743_v25 }
 0x579   :  { %2103 = vpow2.f32 %v1752_v44 }
 0x581   :  { %v2813_v14 = vpop.eup %2101 }
 0x582   :  { %v1766_v19 = vsel %vm1125_vm4, %v2813_v14, 0.0 }
 0x583   :  { %v2817_v34 = vpop.eup %2103  ;;  %1767 = vadd.xlane.f32.xlu1 %v1766_v19 }
 0x584   :  { %v1769_v47 = vsel %vm1125_vm4, %v2817_v34, 0.0 }
 0x585   :  { %1770 = vadd.xlane.f32.xlu0 %v1769_v47 }
 0x5e5   :  { %v1726_v21 = vpop.xlane.xlu0 %1725 }
 0x5e6   :  { %v1744_v48 = vsub.f32 %v1344_v23, %v1726_v21 }
 0x5e8   :  { %v1754_v12 = vmul.f32 1.442695, %v1744_v48 }
 0x5e9   :  { %v1732_v17 = vpop.xlane.xlu1 %1731  ;;  %v1729_v42 = vpop.xlane.xlu0 %1728 }
 0x5ea   :  { %2105 = vpow2.f32 %v1754_v12  ;;  %v1746_v45 = vsub.f32 %v1492_v28, %v1732_v17  ;;  %v1745_v50 = vsub.f32 %v1418_v26, %v1729_v42 }
 0x5ec   :  { %v1758_v51 = vmul.f32 1.442695, %v1746_v45  ;;  %v1756_v54 = vmul.f32 1.442695, %v1745_v50 }
 0x5ed   :  { %v1735_v46 = vpop.xlane.xlu0 %1734 }
 0x5ee   :  { %2107 = vpow2.f32 %v1758_v51  ;;  %v1747_v49 = vsub.f32 %v1566_v0, %v1735_v46  ;;  %v1738_v13 = vpop.xlane.xlu1 %1737 }
 0x5ef   :  { %2109 = vpow2.f32 %v1756_v54  ;;  %v1748_v55 = vsub.f32 %v1640_v37, %v1738_v13 }
 0x5f0   :  { %v1760_v57 = vmul.f32 1.442695, %v1747_v49 }
 0x5f1   :  { %v1762_v59 = vmul.f32 1.442695, %v1748_v55  ;;  %v1741_v29 = vpop.xlane.xlu0 %1740 }
 0x5f2   :  { %2111 = vpow2.f32 %v1760_v57  ;;  %v1749_v53 = vsub.f32 %v1714_v41, %v1741_v29 }
 0x5f3   :  { %2113 = vpow2.f32 %v1762_v59 }
 0x5f4   :  { %v2106_v60 = vpop.eup %2105  ;;  %v1764_v38 = vmul.f32 1.442695, %v1749_v53 }
 0x5f5   :  { %v1772_v62 = vsel %vm1125_vm4, %v2106_v60, 0.0 }
 0x5f6   :  { %2115 = vpow2.f32 %v1764_v38  ;;  %1773 = vadd.xlane.f32.xlu1 %v1772_v62 }
 0x5f8   :  { %v2108_v56 = vpop.eup %2107 }
 0x5f9   :  { %v2110_v2 = vpop.eup %2109  ;;  %v1778_v3 = vsel %vm1125_vm4, %v2108_v56, 0.0 }
 0x5fa   :  { %1779 = vadd.xlane.f32.xlu1 %v1778_v3  ;;  %v1775_v5 = vsel %vm1125_vm4, %v2110_v2, 0.0 }
 0x5fb   :  { %1776 = vadd.xlane.f32.xlu0 %v1775_v5 }
 0x5fc   :  { %v2112_v52 = vpop.eup %2111 }
 0x5fd   :  { %v2114_v6 = vpop.eup %2113  ;;  %v1781_v7 = vsel %vm1125_vm4, %v2112_v52, 0.0 }
 0x5fe   :  { %v1784_v58 = vsel %vm1125_vm4, %v2114_v6, 0.0 }
 0x5ff   :  { %1782 = vadd.xlane.f32.xlu0 %v1781_v7  ;;  %1785 = vadd.xlane.f32.xlu1 %v1784_v58 }
 0x600   :  { %v2116_v8 = vpop.eup %2115 }
 0x601   :  { %v1787_v11 = vsel %vm1125_vm4, %v2116_v8, 0.0 }
 0x603   :  { %1788 = vadd.xlane.f32.xlu0 %v1787_v11 }
 0x610   :  { %v1768_v15 = vpop.xlane.xlu1 %1767 }
 0x612   :  { %v1771_v18 = vpop.xlane.xlu0 %1770 }
 0x683   :  { %v1774_v16 = vpop.xlane.xlu1 %1773 }
 0x684   :  { %2117 = vrcp.f32 %v1774_v16 }
 0x685   :  { %2119 = vrcp.f32 %v1768_v15 }
 0x686   :  { %2121 = vrcp.f32 %v1771_v18 }
 0x687   :  { %v1780_v61 = vpop.xlane.xlu1 %1779 }
 0x688   :  { %2123 = vrcp.f32 %v1780_v61  ;;  %v1777_v20 = vpop.xlane.xlu0 %1776 }
 0x689   :  { %2125 = vrcp.f32 %v1777_v20 }
 0x68c   :  { %v1783_v63 = vpop.xlane.xlu0 %1782  ;;  %v1786_v23 = vpop.xlane.xlu1 %1785 }
 0x68d   :  { %2127 = vrcp.f32 %v1783_v63 }
 0x68e   :  { %v2118_v10 = vpop.eup %2117  ;;  %2129 = vrcp.f32 %v1786_v23 }
 0x68f   :  { %v2120_v1 = vpop.eup %2119  ;;  %v1800_v28 = vmul.f32 0.25, %v2118_v10 }
 0x690   :  { %v1789_v26 = vpop.xlane.xlu0 %1788  ;;  %v2122_v27 = vpop.eup %2121  ;;  %v1798_v35 = vmul.f32 0.25, %v2120_v1 }
 0x691   :  { %2131 = vrcp.f32 %v1789_v26  ;;  %v1808_v37 = vmul.f32 %v2106_v60, %v1800_v28  ;;  %v1799_v39 = vmul.f32 0.25, %v2122_v27 }
 0x692   :  { %v2124_v30 = vpop.eup %2123  ;;  %v1806_v40 = vmul.f32 %v2813_v14, %v1798_v35 }
 0x693   :  { %v2126_v32 = vpop.eup %2125  ;;  %v1802_v0 = vmul.f32 0.25, %v2124_v30  ;;  %v1807_v22 = vmul.f32 %v2817_v34, %v1799_v39 }
 0x694   :  { %v1801_v36 = vmul.f32 0.25, %v2126_v32  ;;  %v1814_v31 = vadd.f32 %v1808_v37, %v1806_v40 }
 0x695   :  { %v1810_v41 = vmul.f32 %v2108_v56, %v1802_v0 }
 0x696   :  { %v1809_v24 = vmul.f32 %v2110_v2, %v1801_v36 }
 0x697   :  { %v2128_v33 = vpop.eup %2127  ;;  %v1816_v19 = vadd.f32 %v1814_v31, %v1810_v41 }
 0x698   :  { %v2130_v4 = vpop.eup %2129  ;;  %v1803_v9 = vmul.f32 0.25, %v2128_v33  ;;  %v1815_v21 = vadd.f32 %v1809_v24, %v1807_v22 }
 0x699   :  { %v1804_v43 = vmul.f32 0.25, %v2130_v4 }
 0x69a   :  { %v1811_v25 = vmul.f32 %v2112_v52, %v1803_v9 }
 0x69b   :  { %v2132_v44 = vpop.eup %2131  ;;  %v1812_v47 = vmul.f32 %v2114_v6, %v1804_v43 }
 0x69c   :  { %v1805_v48 = vmul.f32 0.25, %v2132_v44  ;;  %v1817_v17 = vadd.f32 %v1815_v21, %v1811_v25 }
 0x69d   :  { %v1818_v12 = vadd.f32 %v1816_v19, %v1812_v47 }
 0x69e   :  { %v1813_v42 = vmul.f32 %v2116_v8, %v1805_v48 }
 0x69f   :  { %1820 = vst.msk [vmem:[#allocation14] sm:$0xff] %vm1125_vm4, %v1818_v12 }
 0x6a0   :  { %v1819_v14 = vadd.f32 %v1817_v17, %v1813_v42 }
 0x6a2   :  { %1821 = vst.msk [vmem:[#allocation14 + $0x8] sm:$0xff] %vm1125_vm4, %v1819_v14 }
 0x6a3   :  { %2298 = shalt.err (!%p2295_p4)
}
 0x6a4   :  { %s2299_s22 = scalar_lea.hbm %s2858_s12, 256 }
 0x6a5   :  { %p2300_p5 = scmp.ne.s32.totalorder %s2858_s12, %s2299_s22  ;;  %p2303_p6 = scmp.lt.u32.totalorder %s2299_s22, %s2858_s12 }
 0x6a7   :  { %p2305_p7 = pnand %p2303_p6, %p2300_p5 }
 0x6a9   :  { %2308 = shalt.err (!%p2305_p7)
}
 0x6aa   :  { %1833 = dma.vmem_to_hbm [thread:$0]  %s1828_s21, 256, %s2858_s12, [#allocation4], %s2320_s13, %s2320_s13, %s2321_s14  }
 0x6ab   :  { %2317 = dma.done.wait [#allocation4], 256  }
 0x6ac   :  { %2318 = vsyncadd [#allocation4], 4294967040 }
 0x6ad   :  { %1837 = vsyncpa [#allocation3], 1 }
 0x6ae   :  { %1838 = vsyncpa [#allocation6], 1 }
 0x6af   :  { %1839 = vsyncpa [#allocation9], 1 }
 0x6b0   :  { %1840 = vsyncpa [#allocation12], 1 }
 0x6b1   :  { %1841 = vsyncpa [#allocation4], 1 }

</bundles_post_ra>
